<compile_context>
chip_gen: v7x
topology: tpu7x:2x2x1
jax: 0.10.0
libtpu: 0.0.40
codegen_flags: <defaults>
</compile_context>

<pallas_src>
import functools

import numpy as np
import jax
import jax.numpy as jnp
from jax.experimental import pallas as pl
from jax.experimental.pallas import tpu as pltpu


def _cbam_kernel(x_ref, w1t_ref, w2_ref, taps_ref, bsa_ref, o_ref, s_ref,
                 *, H, W, K, block_b):
    """One grid step: `block_b` images, each a (C, HWp) lane-dense tile.

    x_ref    : (block_b, C, HWp)        input images (caller dtype)
    w1t_ref  : (C, Cr) f32              first 1x1 conv weight, pre-transposed
    w2_ref   : (C, Cr) f32              second 1x1 conv weight (native layout)
    taps_ref : (K*K, R_pad, HWp) f32    per-tap weight*mask rows, pre-stacked to
                                        match the packed avg/max row layout
    bsa_ref  : (1,) f32 in SMEM         spatial-conv bias
    o_ref    : (block_b, C, HWp)        output (caller dtype)
    s_ref    : (R_pad, HWp) f32 VMEM    packed [avg rows | max rows] scratch
    """
    C = x_ref.shape[1]
    HWp = x_ref.shape[2]
    R_pad = s_ref.shape[0]
    P = K // 2
    inv_hw = 1.0 / float(H * W)
    inv_c = 1.0 / float(C)

    w1t = w1t_ref[...]                      # (C, Cr)
    w2 = w2_ref[...]                        # (C, Cr)
    bias = bsa_ref[0]                       # SMEM scalar

    x = x_ref[...].astype(jnp.float32)      # (B, C, HWp), f32 accumulation

    # ---- channel attention -------------------------------------------------
    # Batched global average pool (lane-axis reduction over the whole tile).
    pooled = jnp.sum(x, axis=2, keepdims=True) * inv_hw          # (B, C, 1)

    # Hygiene: zero the sublane-padding rows of the packed avg/max tile once.
    if R_pad > 2 * block_b:
        s_ref[pl.ds(2 * block_b, R_pad - 2 * block_b), :] = jnp.zeros(
            (R_pad - 2 * block_b, HWp), jnp.float32)

    xcs = []
    for b in range(block_b):
        # Tiny 1x1 convs (C x Cr): per-image VPU broadcast-reduces (no MXU).
        h = jnp.maximum(
            jnp.sum(pooled[b] * w1t, axis=0, keepdims=True), 0.0)  # (1, Cr)
        ca = jax.nn.sigmoid(
            jnp.sum(h * w2, axis=1, keepdims=True))                # (C, 1)
        xc = x[b] * ca                                             # (C, HWp)
        xcs.append(xc)
        # Pack channel-avg / channel-max rows: rows [0,B) = avg, [B,2B) = max.
        s_ref[pl.ds(b, 1), :] = jnp.sum(xc, axis=0, keepdims=True) * inv_c
        s_ref[pl.ds(block_b + b, 1), :] = jnp.max(xc, axis=0, keepdims=True)

    # ---- spatial attention: 49-tap shift-and-add on the packed tile --------
    # One XLU lane-roll + one VPU FMA per tap for ALL maps * images at once.
    # 4 independent accumulators break the serial roll->mul->add chain.
    S = s_ref[...]                                                 # (R_pad, HWp)
    accs = [None, None, None, None]
    for ky in range(K):
        for kx in range(K):
            t = ky * K + kx
            off = (ky - P) * W + (kx - P)
            shift = (-off) % HWp
            rolled = S if shift == 0 else pltpu.roll(S, shift, axis=1)
            term = rolled * taps_ref[t]                            # (R_pad, HWp)
            i = t % 4
            accs[i] = term if accs[i] is None else accs[i] + term
    parts = [a for a in accs if a is not None]
    acc = parts[0]
    for p in parts[1:]:
        acc = acc + p                                              # (R_pad, HWp)

    # ---- finalize: sigmoid + apply spatial attention per image --------------
    for b in range(block_b):
        sa = jax.nn.sigmoid(acc[b:b + 1, :]
                            + acc[block_b + b:block_b + b + 1, :]
                            + bias)                                # (1, HWp)
        o_ref[b] = (xcs[b] * sa).astype(o_ref.dtype)               # (C, HWp)


def _tap_border_masks(H, W, K, HWp):
    """(K*K, HWp) 0/1 masks: tap (ky,kx) contributes to flattened output q only
    if the source pixel (qy+ky-P, qx+kx-P) lies inside the HxW image.  These
    masks also zero every roll-wrapped / lane-padded source."""
    P = K // 2
    q = np.arange(HWp)
    qy, qx = q // W, q % W
    in_img = q < H * W
    masks = np.zeros((K * K, HWp), np.float32)
    for ky in range(K):
        for kx in range(K):
            dy, dx = ky - P, kx - P
            ok = (in_img
                  & (qy + dy >= 0) & (qy + dy < H)
                  & (qx + dx >= 0) & (qx + dx < W))
            masks[ky * K + kx] = ok.astype(np.float32)
    return masks


def cbam_pallas(x_nchw, w1, w2, w_sa, b_sa):
    """CBAM forward. x:(N,C,H,W)  w1:(Cr,C)  w2:(C,Cr)  w_sa:(1,2,K,K)  b_sa:(1,).

    x may be float32 or bfloat16; HBM I/O keeps the caller dtype, in-kernel math
    is float32.
    """
    N, C, H, W = x_nchw.shape
    Cr = w1.shape[0]
    K = w_sa.shape[-1]
    HW = H * W
    HWp = ((HW + 127) // 128) * 128               # lane-dense spatial axis
    io_dtype = x_nchw.dtype
    io_item = jnp.dtype(io_dtype).itemsize

    # ---- block_b sizing: VMEM-derived, >= 2 grid steps, prefer divisor of N.
    def _vmem_need(bb):
        rpad = ((2 * bb + 7) // 8) * 8
        io_tile = bb * C * HWp * io_item
        f32_tile = bb * C * HWp * 4
        taps_bytes = (K * K) * rpad * HWp * 4
        return (2 * 2 * io_tile              # double-buffered in + out tiles
                + 2 * taps_bytes             # (double-buffered) tap tables
                + (5 * f32_tile) // 2        # in-kernel f32 temporaries (x, xc)
                + rpad * HWp * 4             # packed avg/max scratch
                + 4 * C * Cr * 4)            # 1x1 conv weights

    vmem_limit = 32 * 1024 * 1024            # lifts v5e's 16 MiB default; fits
    budget = 20 * 1024 * 1024                # v7x's 64 MiB physical with headroom
    bb_cap = min(32, max(1, N // 2))         # keep >= 2 steps for v7x dual-TC
    block_b = 1
    for cand in range(bb_cap, 0, -1):
        if _vmem_need(cand) <= budget:
            block_b = cand
            break
    # Prefer a divisor of N: avoids an extra full-HBM pad pass on the batch axis
    # (only fall back to padding if the best divisor would halve the tile).
    best_div = max(d for d in range(1, block_b + 1) if N % d == 0)
    if 2 * best_div >= block_b:
        block_b = best_div
    Np = int(pl.cdiv(N, block_b)) * block_b
    R_pad = ((2 * block_b + 7) // 8) * 8

    # ---- input prep (padded lanes MUST be exact zeros; see masks invariant).
    x_flat = jnp.reshape(x_nchw, (N, C, HW))
    if HWp != HW:
        x_flat = jnp.pad(x_flat, ((0, 0), (0, 0), (0, HWp - HW)))
    if Np != N:
        x_flat = jnp.pad(x_flat, ((0, Np - N), (0, 0), (0, 0)))

    # ---- host-side prep: fold conv weights + border masks into stacked tables
    # whose row layout matches the packed [avg rows | max rows] scratch, so the
    # in-kernel tap FMA needs no per-tap broadcast_in_dim.
    w1t = jnp.asarray(w1, jnp.float32).T                         # (C, Cr)
    w2f = jnp.asarray(w2, jnp.float32)                           # (C, Cr)
    w_flat = jnp.reshape(jnp.asarray(w_sa, jnp.float32), (2, K * K))
    masks = jnp.asarray(_tap_border_masks(H, W, K, HWp))         # (K*K, HWp)
    wma = masks * w_flat[0][:, None]                             # avg-map taps
    wmm = masks * w_flat[1][:, None]                             # max-map taps
    parts = [jnp.broadcast_to(wma[:, None, :], (K * K, block_b, HWp)),
             jnp.broadcast_to(wmm[:, None, :], (K * K, block_b, HWp))]
    if R_pad > 2 * block_b:
        parts.append(jnp.zeros((K * K, R_pad - 2 * block_b, HWp), jnp.float32))
    taps = jnp.concatenate(parts, axis=1)                        # (K*K, R_pad, HWp)
    b_sa_f32 = jnp.asarray(b_sa, jnp.float32).reshape(1)

    grid_spec = pltpu.PrefetchScalarGridSpec(
        num_scalar_prefetch=0,
        grid=(Np // block_b,),
        in_specs=[
            pl.BlockSpec((block_b, C, HWp), lambda i: (i, 0, 0)),    # x tile
            pl.BlockSpec((C, Cr), lambda i: (0, 0)),                 # w1^T
            pl.BlockSpec((C, Cr), lambda i: (0, 0)),                 # w2
            pl.BlockSpec((K * K, R_pad, HWp), lambda i: (0, 0, 0)),  # tap tables
            pl.BlockSpec(memory_space=pltpu.MemorySpace.SMEM),       # bias scalar
        ],
        out_specs=pl.BlockSpec((block_b, C, HWp), lambda i: (i, 0, 0)),
        scratch_shapes=[pltpu.VMEM((R_pad, HWp), jnp.float32)],      # packed avg/max
    )

    out_flat = pl.pallas_call(
        functools.partial(_cbam_kernel, H=H, W=W, K=K, block_b=block_b),
        out_shape=jax.ShapeDtypeStruct((Np, C, HWp), io_dtype),
        grid_spec=grid_spec,
        compiler_params=pltpu.CompilerParams(
            dimension_semantics=("parallel",),
            vmem_limit_bytes=vmem_limit),
    )(x_flat, w1t, w2f, taps, b_sa_f32)

    return out_flat[:N, :, :HW].reshape(N, C, H, W)


def cbam_reference(x, w1, w2, w_sa, b_sa):
    """Pure-JAX reference matching the PyTorch module semantics (NCHW)."""
    pooled = jnp.mean(x, axis=(2, 3))                          # AdaptiveAvgPool2d(1)
    h = jnp.maximum(pooled @ w1.T, 0.0)                        # 1x1 conv + ReLU
    ca = jax.nn.sigmoid(h @ w2.T)                              # 1x1 conv + Sigmoid
    xc = x * ca[:, :, None, None]
    avg = jnp.mean(xc, axis=1, keepdims=True)
    mx = jnp.max(xc, axis=1, keepdims=True)
    inp = jnp.concatenate([avg, mx], axis=1)                   # (N,2,H,W)
    sa = jax.lax.conv_general_dilated(
        inp, w_sa, window_strides=(1, 1), padding="SAME",
        dimension_numbers=("NCHW", "OIHW", "NCHW"))
    sa = jax.nn.sigmoid(sa + b_sa.reshape(1, 1, 1, 1))
    return xc * sa


if __name__ == "__main__":
    # channels must be >= reduction_ratio (default 16) for the PyTorch module to
    # be well-formed, so channels=64 (hidden = 64 // 16 = 4); N=4 exercises the
    # batched tile (block_b=2 -> 2 "parallel" grid steps).
    N, C, H, W = 4, 64, 16, 16
    reduction_ratio, K = 16, 7
    Cr = C // reduction_ratio

    key = jax.random.PRNGKey(0)
    kx, k1, k2, k3, k4 = jax.random.split(key, 5)
    x = jax.random.normal(kx, (N, C, H, W), jnp.float32)
    w1 = jax.random.normal(k1, (Cr, C), jnp.float32) * 0.1          # Conv2d(C, Cr, 1, bias=False)
    w2 = jax.random.normal(k2, (C, Cr), jnp.float32) * 0.1          # Conv2d(Cr, C, 1, bias=False)
    w_sa = jax.random.normal(k3, (1, 2, K, K), jnp.float32) * 0.05  # Conv2d(2, 1, 7, pad=3)
    b_sa = jax.random.normal(k4, (1,), jnp.float32) * 0.1

    out = jax.block_until_ready(cbam_pallas(x, w1, w2, w_sa, b_sa))
    ref = jax.block_until_ready(cbam_reference(x, w1, w2, w_sa, b_sa))
    np.testing.assert_allclose(np.asarray(out), np.asarray(ref), rtol=2e-3, atol=2e-3)
    print("KERNEL_OK")
</pallas_src>

<mosaic_0001>
module attributes {stable_mosaic.version = 11 : i64} {
  func.func @_cbam_kernel(%arg0: i32, %arg1: memref<2x64x256xf32, #tpu.memory_space<vmem>>, %arg2: memref<64x4xf32, #tpu.memory_space<vmem>>, %arg3: memref<64x4xf32, #tpu.memory_space<vmem>>, %arg4: memref<49x8x256xf32, #tpu.memory_space<vmem>>, %arg5: memref<1xf32, #tpu.memory_space<smem>>, %arg6: memref<2x64x256xf32, #tpu.memory_space<vmem>>, %arg7: memref<8x256xf32, #tpu.memory_space<vmem>>) attributes {dimension_semantics = [#tpu.dimension_semantics<parallel>], iteration_bounds = array<i64: 2>, scalar_prefetch = 0 : i64, scratch_operands = 1 : i64, tpu.core_type = #tpu.core_type<tc>, window_params = [{transform_indices = @transform_0, window_bounds = array<i64: 2, 64, 256>}, {pipeline_mode = #tpu.pipeline_mode<synchronous>, transform_indices = @transform_1, window_bounds = array<i64: 64, 4>}, {pipeline_mode = #tpu.pipeline_mode<synchronous>, transform_indices = @transform_2, window_bounds = array<i64: 64, 4>}, {pipeline_mode = #tpu.pipeline_mode<synchronous>, transform_indices = @transform_3, window_bounds = array<i64: 49, 8, 256>}, {transform_indices = @transform_4, window_bounds = array<i64: 1>}, {transform_indices = @transform_5, window_bounds = array<i64: 2, 64, 256>}]} {
    %c0 = arith.constant 0 : index
    %c0_0 = arith.constant 0 : index
    %0 = vector.load %arg2[%c0, %c0_0] : memref<64x4xf32, #tpu.memory_space<vmem>>, vector<64x4xf32>
    %c0_1 = arith.constant 0 : index
    %c0_2 = arith.constant 0 : index
    %1 = vector.load %arg3[%c0_1, %c0_2] : memref<64x4xf32, #tpu.memory_space<vmem>>, vector<64x4xf32>
    %c0_3 = arith.constant 0 : index
    %2 = memref.load %arg5[%c0_3] : memref<1xf32, #tpu.memory_space<smem>>
    %c0_4 = arith.constant 0 : index
    %c0_5 = arith.constant 0 : index
    %c0_6 = arith.constant 0 : index
    %3 = vector.load %arg1[%c0_4, %c0_5, %c0_6] : memref<2x64x256xf32, #tpu.memory_space<vmem>>, vector<2x64x256xf32>
    %cst = arith.constant dense<0.000000e+00> : vector<2x64xf32>
    %4 = vector.multi_reduction <add>, %3, %cst [2] : vector<2x64x256xf32> to vector<2x64xf32>
    %5 = vector.shape_cast %4 : vector<2x64xf32> to vector<2x64x1xf32>
    %cst_7 = arith.constant 3.906250e-03 : f32
    %6 = vector.broadcast %cst_7 : f32 to vector<2x64x1xf32>
    %7 = arith.mulf %5, %6 : vector<2x64x1xf32>
    %cst_8 = arith.constant 0.000000e+00 : f32
    %8 = vector.broadcast %cst_8 : f32 to vector<4x256xf32>
    %c4 = arith.constant 4 : index
    %c0_9 = arith.constant 0 : index
    %9 = vector.load %arg7[%c4, %c0_9] : memref<8x256xf32, #tpu.memory_space<vmem>>, vector<4x256xf32>
    tpu.vector_store %arg7[%c4, %c0_9], %8 {strides = array<i32>} : memref<8x256xf32, #tpu.memory_space<vmem>>, vector<4x256xf32>,
    %10 = vector.extract_strided_slice %7 {offsets = [0, 0, 0], sizes = [1, 64, 1], strides = [1, 1, 1]} : vector<2x64x1xf32> to vector<1x64x1xf32>
    %11 = vector.shape_cast %10 : vector<1x64x1xf32> to vector<64x1xf32>
    %12 = vector.broadcast %11 : vector<64x1xf32> to vector<64x4xf32>
    %13 = arith.mulf %12, %0 : vector<64x4xf32>
    %cst_10 = arith.constant dense<0.000000e+00> : vector<4xf32>
    %14 = vector.multi_reduction <add>, %13, %cst_10 [0] : vector<64x4xf32> to vector<4xf32>
    %15 = vector.shape_cast %14 : vector<4xf32> to vector<1x4xf32>
    %cst_11 = arith.constant 0.000000e+00 : f32
    %16 = vector.broadcast %cst_11 : f32 to vector<1x4xf32>
    %17 = arith.maximumf %15, %16 : vector<1x4xf32>
    %18 = vector.broadcast %17 : vector<1x4xf32> to vector<64x4xf32>
    %19 = arith.mulf %18, %1 : vector<64x4xf32>
    %cst_12 = arith.constant dense<0.000000e+00> : vector<64xf32>
    %20 = vector.multi_reduction <add>, %19, %cst_12 [1] : vector<64x4xf32> to vector<64xf32>
    %21 = vector.shape_cast %20 : vector<64xf32> to vector<64x1xf32>
    %22 = arith.negf %21 : vector<64x1xf32>
    %23 = math.exp %22 : vector<64x1xf32>
    %cst_13 = arith.constant 1.000000e+00 : f32
    %24 = vector.broadcast %cst_13 : f32 to vector<64x1xf32>
    %25 = arith.addf %24, %23 : vector<64x1xf32>
    %26 = arith.divf %24, %25 : vector<64x1xf32>
    %27 = vector.extract_strided_slice %3 {offsets = [0, 0, 0], sizes = [1, 64, 256], strides = [1, 1, 1]} : vector<2x64x256xf32> to vector<1x64x256xf32>
    %28 = vector.shape_cast %27 : vector<1x64x256xf32> to vector<64x256xf32>
    %29 = vector.broadcast %26 : vector<64x1xf32> to vector<64x256xf32>
    %30 = arith.mulf %28, %29 : vector<64x256xf32>
    %cst_14 = arith.constant dense<0.000000e+00> : vector<256xf32>
    %31 = vector.multi_reduction <add>, %30, %cst_14 [0] : vector<64x256xf32> to vector<256xf32>
    %32 = vector.shape_cast %31 : vector<256xf32> to vector<1x256xf32>
    %cst_15 = arith.constant 1.562500e-02 : f32
    %33 = vector.broadcast %cst_15 : f32 to vector<1x256xf32>
    %34 = arith.mulf %32, %33 : vector<1x256xf32>
    %c0_16 = arith.constant 0 : index
    %c0_17 = arith.constant 0 : index
    %35 = vector.load %arg7[%c0_16, %c0_17] : memref<8x256xf32, #tpu.memory_space<vmem>>, vector<1x256xf32>
    tpu.vector_store %arg7[%c0_16, %c0_17], %34 {strides = array<i32>} : memref<8x256xf32, #tpu.memory_space<vmem>>, vector<1x256xf32>,
    %cst_18 = arith.constant dense<0xFF800000> : vector<256xf32>
    %36 = vector.multi_reduction <maximumf>, %30, %cst_18 [0] : vector<64x256xf32> to vector<256xf32>
    %37 = vector.shape_cast %36 : vector<256xf32> to vector<1x256xf32>
    %c2 = arith.constant 2 : index
    %c0_19 = arith.constant 0 : index
    %38 = vector.load %arg7[%c2, %c0_19] : memref<8x256xf32, #tpu.memory_space<vmem>>, vector<1x256xf32>
    tpu.vector_store %arg7[%c2, %c0_19], %37 {strides = array<i32>} : memref<8x256xf32, #tpu.memory_space<vmem>>, vector<1x256xf32>,
    %39 = vector.extract_strided_slice %7 {offsets = [1, 0, 0], sizes = [1, 64, 1], strides = [1, 1, 1]} : vector<2x64x1xf32> to vector<1x64x1xf32>
    %40 = vector.shape_cast %39 : vector<1x64x1xf32> to vector<64x1xf32>
    %41 = vector.broadcast %40 : vector<64x1xf32> to vector<64x4xf32>
    %42 = arith.mulf %41, %0 : vector<64x4xf32>
    %cst_20 = arith.constant dense<0.000000e+00> : vector<4xf32>
    %43 = vector.multi_reduction <add>, %42, %cst_20 [0] : vector<64x4xf32> to vector<4xf32>
    %44 = vector.shape_cast %43 : vector<4xf32> to vector<1x4xf32>
    %cst_21 = arith.constant 0.000000e+00 : f32
    %45 = vector.broadcast %cst_21 : f32 to vector<1x4xf32>
    %46 = arith.maximumf %44, %45 : vector<1x4xf32>
    %47 = vector.broadcast %46 : vector<1x4xf32> to vector<64x4xf32>
    %48 = arith.mulf %47, %1 : vector<64x4xf32>
    %cst_22 = arith.constant dense<0.000000e+00> : vector<64xf32>
    %49 = vector.multi_reduction <add>, %48, %cst_22 [1] : vector<64x4xf32> to vector<64xf32>
    %50 = vector.shape_cast %49 : vector<64xf32> to vector<64x1xf32>
    %51 = arith.negf %50 : vector<64x1xf32>
    %52 = math.exp %51 : vector<64x1xf32>
    %cst_23 = arith.constant 1.000000e+00 : f32
    %53 = vector.broadcast %cst_23 : f32 to vector<64x1xf32>
    %54 = arith.addf %53, %52 : vector<64x1xf32>
    %55 = arith.divf %53, %54 : vector<64x1xf32>
    %56 = vector.extract_strided_slice %3 {offsets = [1, 0, 0], sizes = [1, 64, 256], strides = [1, 1, 1]} : vector<2x64x256xf32> to vector<1x64x256xf32>
    %57 = vector.shape_cast %56 : vector<1x64x256xf32> to vector<64x256xf32>
    %58 = vector.broadcast %55 : vector<64x1xf32> to vector<64x256xf32>
    %59 = arith.mulf %57, %58 : vector<64x256xf32>
    %cst_24 = arith.constant dense<0.000000e+00> : vector<256xf32>
    %60 = vector.multi_reduction <add>, %59, %cst_24 [0] : vector<64x256xf32> to vector<256xf32>
    %61 = vector.shape_cast %60 : vector<256xf32> to vector<1x256xf32>
    %cst_25 = arith.constant 1.562500e-02 : f32
    %62 = vector.broadcast %cst_25 : f32 to vector<1x256xf32>
    %63 = arith.mulf %61, %62 : vector<1x256xf32>
    %c1 = arith.constant 1 : index
    %c0_26 = arith.constant 0 : index
    %64 = vector.load %arg7[%c1, %c0_26] : memref<8x256xf32, #tpu.memory_space<vmem>>, vector<1x256xf32>
    tpu.vector_store %arg7[%c1, %c0_26], %63 {strides = array<i32>} : memref<8x256xf32, #tpu.memory_space<vmem>>, vector<1x256xf32>,
    %cst_27 = arith.constant dense<0xFF800000> : vector<256xf32>
    %65 = vector.multi_reduction <maximumf>, %59, %cst_27 [0] : vector<64x256xf32> to vector<256xf32>
    %66 = vector.shape_cast %65 : vector<256xf32> to vector<1x256xf32>
    %c3 = arith.constant 3 : index
    %c0_28 = arith.constant 0 : index
    %67 = vector.load %arg7[%c3, %c0_28] : memref<8x256xf32, #tpu.memory_space<vmem>>, vector<1x256xf32>
    tpu.vector_store %arg7[%c3, %c0_28], %66 {strides = array<i32>} : memref<8x256xf32, #tpu.memory_space<vmem>>, vector<1x256xf32>,
    %c0_29 = arith.constant 0 : index
    %c0_30 = arith.constant 0 : index
    %68 = vector.load %arg7[%c0_29, %c0_30] : memref<8x256xf32, #tpu.memory_space<vmem>>, vector<8x256xf32>
    %c51_i32 = arith.constant 51 : i32
    %69 = tpu.dynamic_rotate %68 by %c51_i32 dim 1 : vector<8x256xf32>, i32 -> vector<8x256xf32>
    %c0_31 = arith.constant 0 : index
    %c0_32 = arith.constant 0 : index
    %c0_33 = arith.constant 0 : index
    %70 = vector.load %arg4[%c0_31, %c0_32, %c0_33] : memref<49x8x256xf32, #tpu.memory_space<vmem>>, vector<1x8x256xf32>
    %71 = vector.shape_cast %70 : vector<1x8x256xf32> to vector<8x256xf32>
    %72 = arith.mulf %69, %71 : vector<8x256xf32>
    %c50_i32 = arith.constant 50 : i32
    %73 = tpu.dynamic_rotate %68 by %c50_i32 dim 1 : vector<8x256xf32>, i32 -> vector<8x256xf32>
    %c1_34 = arith.constant 1 : index
    %c0_35 = arith.constant 0 : index
    %c0_36 = arith.constant 0 : index
    %74 = vector.load %arg4[%c1_34, %c0_35, %c0_36] : memref<49x8x256xf32, #tpu.memory_space<vmem>>, vector<1x8x256xf32>
    %75 = vector.shape_cast %74 : vector<1x8x256xf32> to vector<8x256xf32>
    %76 = arith.mulf %73, %75 : vector<8x256xf32>
    %c49_i32 = arith.constant 49 : i32
    %77 = tpu.dynamic_rotate %68 by %c49_i32 dim 1 : vector<8x256xf32>, i32 -> vector<8x256xf32>
    %c2_37 = arith.constant 2 : index
    %c0_38 = arith.constant 0 : index
    %c0_39 = arith.constant 0 : index
    %78 = vector.load %arg4[%c2_37, %c0_38, %c0_39] : memref<49x8x256xf32, #tpu.memory_space<vmem>>, vector<1x8x256xf32>
    %79 = vector.shape_cast %78 : vector<1x8x256xf32> to vector<8x256xf32>
    %80 = arith.mulf %77, %79 : vector<8x256xf32>
    %c48_i32 = arith.constant 48 : i32
    %81 = tpu.dynamic_rotate %68 by %c48_i32 dim 1 : vector<8x256xf32>, i32 -> vector<8x256xf32>
    %c3_40 = arith.constant 3 : index
    %c0_41 = arith.constant 0 : index
    %c0_42 = arith.constant 0 : index
    %82 = vector.load %arg4[%c3_40, %c0_41, %c0_42] : memref<49x8x256xf32, #tpu.memory_space<vmem>>, vector<1x8x256xf32>
    %83 = vector.shape_cast %82 : vector<1x8x256xf32> to vector<8x256xf32>
    %84 = arith.mulf %81, %83 : vector<8x256xf32>
    %c47_i32 = arith.constant 47 : i32
    %85 = tpu.dynamic_rotate %68 by %c47_i32 dim 1 : vector<8x256xf32>, i32 -> vector<8x256xf32>
    %c4_43 = arith.constant 4 : index
    %c0_44 = arith.constant 0 : index
    %c0_45 = arith.constant 0 : index
    %86 = vector.load %arg4[%c4_43, %c0_44, %c0_45] : memref<49x8x256xf32, #tpu.memory_space<vmem>>, vector<1x8x256xf32>
    %87 = vector.shape_cast %86 : vector<1x8x256xf32> to vector<8x256xf32>
    %88 = arith.mulf %85, %87 : vector<8x256xf32>
    %89 = arith.addf %72, %88 : vector<8x256xf32>
    %c46_i32 = arith.constant 46 : i32
    %90 = tpu.dynamic_rotate %68 by %c46_i32 dim 1 : vector<8x256xf32>, i32 -> vector<8x256xf32>
    %c5 = arith.constant 5 : index
    %c0_46 = arith.constant 0 : index
    %c0_47 = arith.constant 0 : index
    %91 = vector.load %arg4[%c5, %c0_46, %c0_47] : memref<49x8x256xf32, #tpu.memory_space<vmem>>, vector<1x8x256xf32>
    %92 = vector.shape_cast %91 : vector<1x8x256xf32> to vector<8x256xf32>
    %93 = arith.mulf %90, %92 : vector<8x256xf32>
    %94 = arith.addf %76, %93 : vector<8x256xf32>
    %c45_i32 = arith.constant 45 : i32
    %95 = tpu.dynamic_rotate %68 by %c45_i32 dim 1 : vector<8x256xf32>, i32 -> vector<8x256xf32>
    %c6 = arith.constant 6 : index
    %c0_48 = arith.constant 0 : index
    %c0_49 = arith.constant 0 : index
    %96 = vector.load %arg4[%c6, %c0_48, %c0_49] : memref<49x8x256xf32, #tpu.memory_space<vmem>>, vector<1x8x256xf32>
    %97 = vector.shape_cast %96 : vector<1x8x256xf32> to vector<8x256xf32>
    %98 = arith.mulf %95, %97 : vector<8x256xf32>
    %99 = arith.addf %80, %98 : vector<8x256xf32>
    %c35_i32 = arith.constant 35 : i32
    %100 = tpu.dynamic_rotate %68 by %c35_i32 dim 1 : vector<8x256xf32>, i32 -> vector<8x256xf32>
    %c7 = arith.constant 7 : index
    %c0_50 = arith.constant 0 : index
    %c0_51 = arith.constant 0 : index
    %101 = vector.load %arg4[%c7, %c0_50, %c0_51] : memref<49x8x256xf32, #tpu.memory_space<vmem>>, vector<1x8x256xf32>
    %102 = vector.shape_cast %101 : vector<1x8x256xf32> to vector<8x256xf32>
    %103 = arith.mulf %100, %102 : vector<8x256xf32>
    %104 = arith.addf %84, %103 : vector<8x256xf32>
    %c34_i32 = arith.constant 34 : i32
    %105 = tpu.dynamic_rotate %68 by %c34_i32 dim 1 : vector<8x256xf32>, i32 -> vector<8x256xf32>
    %c8 = arith.constant 8 : index
    %c0_52 = arith.constant 0 : index
    %c0_53 = arith.constant 0 : index
    %106 = vector.load %arg4[%c8, %c0_52, %c0_53] : memref<49x8x256xf32, #tpu.memory_space<vmem>>, vector<1x8x256xf32>
    %107 = vector.shape_cast %106 : vector<1x8x256xf32> to vector<8x256xf32>
    %108 = arith.mulf %105, %107 : vector<8x256xf32>
    %109 = arith.addf %89, %108 : vector<8x256xf32>
    %c33_i32 = arith.constant 33 : i32
    %110 = tpu.dynamic_rotate %68 by %c33_i32 dim 1 : vector<8x256xf32>, i32 -> vector<8x256xf32>
    %c9 = arith.constant 9 : index
    %c0_54 = arith.constant 0 : index
    %c0_55 = arith.constant 0 : index
    %111 = vector.load %arg4[%c9, %c0_54, %c0_55] : memref<49x8x256xf32, #tpu.memory_space<vmem>>, vector<1x8x256xf32>
    %112 = vector.shape_cast %111 : vector<1x8x256xf32> to vector<8x256xf32>
    %113 = arith.mulf %110, %112 : vector<8x256xf32>
    %114 = arith.addf %94, %113 : vector<8x256xf32>
    %c32_i32 = arith.constant 32 : i32
    %115 = tpu.dynamic_rotate %68 by %c32_i32 dim 1 : vector<8x256xf32>, i32 -> vector<8x256xf32>
    %c10 = arith.constant 10 : index
    %c0_56 = arith.constant 0 : index
    %c0_57 = arith.constant 0 : index
    %116 = vector.load %arg4[%c10, %c0_56, %c0_57] : memref<49x8x256xf32, #tpu.memory_space<vmem>>, vector<1x8x256xf32>
    %117 = vector.shape_cast %116 : vector<1x8x256xf32> to vector<8x256xf32>
    %118 = arith.mulf %115, %117 : vector<8x256xf32>
    %119 = arith.addf %99, %118 : vector<8x256xf32>
    %c31_i32 = arith.constant 31 : i32
    %120 = tpu.dynamic_rotate %68 by %c31_i32 dim 1 : vector<8x256xf32>, i32 -> vector<8x256xf32>
    %c11 = arith.constant 11 : index
    %c0_58 = arith.constant 0 : index
    %c0_59 = arith.constant 0 : index
    %121 = vector.load %arg4[%c11, %c0_58, %c0_59] : memref<49x8x256xf32, #tpu.memory_space<vmem>>, vector<1x8x256xf32>
    %122 = vector.shape_cast %121 : vector<1x8x256xf32> to vector<8x256xf32>
    %123 = arith.mulf %120, %122 : vector<8x256xf32>
    %124 = arith.addf %104, %123 : vector<8x256xf32>
    %c30_i32 = arith.constant 30 : i32
    %125 = tpu.dynamic_rotate %68 by %c30_i32 dim 1 : vector<8x256xf32>, i32 -> vector<8x256xf32>
    %c12 = arith.constant 12 : index
    %c0_60 = arith.constant 0 : index
    %c0_61 = arith.constant 0 : index
    %126 = vector.load %arg4[%c12, %c0_60, %c0_61] : memref<49x8x256xf32, #tpu.memory_space<vmem>>, vector<1x8x256xf32>
    %127 = vector.shape_cast %126 : vector<1x8x256xf32> to vector<8x256xf32>
    %128 = arith.mulf %125, %127 : vector<8x256xf32>
    %129 = arith.addf %109, %128 : vector<8x256xf32>
    %c29_i32 = arith.constant 29 : i32
    %130 = tpu.dynamic_rotate %68 by %c29_i32 dim 1 : vector<8x256xf32>, i32 -> vector<8x256xf32>
    %c13 = arith.constant 13 : index
    %c0_62 = arith.constant 0 : index
    %c0_63 = arith.constant 0 : index
    %131 = vector.load %arg4[%c13, %c0_62, %c0_63] : memref<49x8x256xf32, #tpu.memory_space<vmem>>, vector<1x8x256xf32>
    %132 = vector.shape_cast %131 : vector<1x8x256xf32> to vector<8x256xf32>
    %133 = arith.mulf %130, %132 : vector<8x256xf32>
    %134 = arith.addf %114, %133 : vector<8x256xf32>
    %c19_i32 = arith.constant 19 : i32
    %135 = tpu.dynamic_rotate %68 by %c19_i32 dim 1 : vector<8x256xf32>, i32 -> vector<8x256xf32>
    %c14 = arith.constant 14 : index
    %c0_64 = arith.constant 0 : index
    %c0_65 = arith.constant 0 : index
    %136 = vector.load %arg4[%c14, %c0_64, %c0_65] : memref<49x8x256xf32, #tpu.memory_space<vmem>>, vector<1x8x256xf32>
    %137 = vector.shape_cast %136 : vector<1x8x256xf32> to vector<8x256xf32>
    %138 = arith.mulf %135, %137 : vector<8x256xf32>
    %139 = arith.addf %119, %138 : vector<8x256xf32>
    %c18_i32 = arith.constant 18 : i32
    %140 = tpu.dynamic_rotate %68 by %c18_i32 dim 1 : vector<8x256xf32>, i32 -> vector<8x256xf32>
    %c15 = arith.constant 15 : index
    %c0_66 = arith.constant 0 : index
    %c0_67 = arith.constant 0 : index
    %141 = vector.load %arg4[%c15, %c0_66, %c0_67] : memref<49x8x256xf32, #tpu.memory_space<vmem>>, vector<1x8x256xf32>
    %142 = vector.shape_cast %141 : vector<1x8x256xf32> to vector<8x256xf32>
    %143 = arith.mulf %140, %142 : vector<8x256xf32>
    %144 = arith.addf %124, %143 : vector<8x256xf32>
    %c17_i32 = arith.constant 17 : i32
    %145 = tpu.dynamic_rotate %68 by %c17_i32 dim 1 : vector<8x256xf32>, i32 -> vector<8x256xf32>
    %c16 = arith.constant 16 : index
    %c0_68 = arith.constant 0 : index
    %c0_69 = arith.constant 0 : index
    %146 = vector.load %arg4[%c16, %c0_68, %c0_69] : memref<49x8x256xf32, #tpu.memory_space<vmem>>, vector<1x8x256xf32>
    %147 = vector.shape_cast %146 : vector<1x8x256xf32> to vector<8x256xf32>
    %148 = arith.mulf %145, %147 : vector<8x256xf32>
    %149 = arith.addf %129, %148 : vector<8x256xf32>
    %c16_i32 = arith.constant 16 : i32
    %150 = tpu.dynamic_rotate %68 by %c16_i32 dim 1 : vector<8x256xf32>, i32 -> vector<8x256xf32>
    %c17 = arith.constant 17 : index
    %c0_70 = arith.constant 0 : index
    %c0_71 = arith.constant 0 : index
    %151 = vector.load %arg4[%c17, %c0_70, %c0_71] : memref<49x8x256xf32, #tpu.memory_space<vmem>>, vector<1x8x256xf32>
    %152 = vector.shape_cast %151 : vector<1x8x256xf32> to vector<8x256xf32>
    %153 = arith.mulf %150, %152 : vector<8x256xf32>
    %154 = arith.addf %134, %153 : vector<8x256xf32>
    %c15_i32 = arith.constant 15 : i32
    %155 = tpu.dynamic_rotate %68 by %c15_i32 dim 1 : vector<8x256xf32>, i32 -> vector<8x256xf32>
    %c18 = arith.constant 18 : index
    %c0_72 = arith.constant 0 : index
    %c0_73 = arith.constant 0 : index
    %156 = vector.load %arg4[%c18, %c0_72, %c0_73] : memref<49x8x256xf32, #tpu.memory_space<vmem>>, vector<1x8x256xf32>
    %157 = vector.shape_cast %156 : vector<1x8x256xf32> to vector<8x256xf32>
    %158 = arith.mulf %155, %157 : vector<8x256xf32>
    %159 = arith.addf %139, %158 : vector<8x256xf32>
    %c14_i32 = arith.constant 14 : i32
    %160 = tpu.dynamic_rotate %68 by %c14_i32 dim 1 : vector<8x256xf32>, i32 -> vector<8x256xf32>
    %c19 = arith.constant 19 : index
    %c0_74 = arith.constant 0 : index
    %c0_75 = arith.constant 0 : index
    %161 = vector.load %arg4[%c19, %c0_74, %c0_75] : memref<49x8x256xf32, #tpu.memory_space<vmem>>, vector<1x8x256xf32>
    %162 = vector.shape_cast %161 : vector<1x8x256xf32> to vector<8x256xf32>
    %163 = arith.mulf %160, %162 : vector<8x256xf32>
    %164 = arith.addf %144, %163 : vector<8x256xf32>
    %c13_i32 = arith.constant 13 : i32
    %165 = tpu.dynamic_rotate %68 by %c13_i32 dim 1 : vector<8x256xf32>, i32 -> vector<8x256xf32>
    %c20 = arith.constant 20 : index
    %c0_76 = arith.constant 0 : index
    %c0_77 = arith.constant 0 : index
    %166 = vector.load %arg4[%c20, %c0_76, %c0_77] : memref<49x8x256xf32, #tpu.memory_space<vmem>>, vector<1x8x256xf32>
    %167 = vector.shape_cast %166 : vector<1x8x256xf32> to vector<8x256xf32>
    %168 = arith.mulf %165, %167 : vector<8x256xf32>
    %169 = arith.addf %149, %168 : vector<8x256xf32>
    %c3_i32 = arith.constant 3 : i32
    %170 = tpu.dynamic_rotate %68 by %c3_i32 dim 1 : vector<8x256xf32>, i32 -> vector<8x256xf32>
    %c21 = arith.constant 21 : index
    %c0_78 = arith.constant 0 : index
    %c0_79 = arith.constant 0 : index
    %171 = vector.load %arg4[%c21, %c0_78, %c0_79] : memref<49x8x256xf32, #tpu.memory_space<vmem>>, vector<1x8x256xf32>
    %172 = vector.shape_cast %171 : vector<1x8x256xf32> to vector<8x256xf32>
    %173 = arith.mulf %170, %172 : vector<8x256xf32>
    %174 = arith.addf %154, %173 : vector<8x256xf32>
    %c2_i32 = arith.constant 2 : i32
    %175 = tpu.dynamic_rotate %68 by %c2_i32 dim 1 : vector<8x256xf32>, i32 -> vector<8x256xf32>
    %c22 = arith.constant 22 : index
    %c0_80 = arith.constant 0 : index
    %c0_81 = arith.constant 0 : index
    %176 = vector.load %arg4[%c22, %c0_80, %c0_81] : memref<49x8x256xf32, #tpu.memory_space<vmem>>, vector<1x8x256xf32>
    %177 = vector.shape_cast %176 : vector<1x8x256xf32> to vector<8x256xf32>
    %178 = arith.mulf %175, %177 : vector<8x256xf32>
    %179 = arith.addf %159, %178 : vector<8x256xf32>
    %c1_i32 = arith.constant 1 : i32
    %180 = tpu.dynamic_rotate %68 by %c1_i32 dim 1 : vector<8x256xf32>, i32 -> vector<8x256xf32>
    %c23 = arith.constant 23 : index
    %c0_82 = arith.constant 0 : index
    %c0_83 = arith.constant 0 : index
    %181 = vector.load %arg4[%c23, %c0_82, %c0_83] : memref<49x8x256xf32, #tpu.memory_space<vmem>>, vector<1x8x256xf32>
    %182 = vector.shape_cast %181 : vector<1x8x256xf32> to vector<8x256xf32>
    %183 = arith.mulf %180, %182 : vector<8x256xf32>
    %184 = arith.addf %164, %183 : vector<8x256xf32>
    %c24 = arith.constant 24 : index
    %c0_84 = arith.constant 0 : index
    %c0_85 = arith.constant 0 : index
    %185 = vector.load %arg4[%c24, %c0_84, %c0_85] : memref<49x8x256xf32, #tpu.memory_space<vmem>>, vector<1x8x256xf32>
    %186 = vector.shape_cast %185 : vector<1x8x256xf32> to vector<8x256xf32>
    %187 = arith.mulf %68, %186 : vector<8x256xf32>
    %188 = arith.addf %169, %187 : vector<8x256xf32>
    %c255_i32 = arith.constant 255 : i32
    %189 = tpu.dynamic_rotate %68 by %c255_i32 dim 1 : vector<8x256xf32>, i32 -> vector<8x256xf32>
    %c25 = arith.constant 25 : index
    %c0_86 = arith.constant 0 : index
    %c0_87 = arith.constant 0 : index
    %190 = vector.load %arg4[%c25, %c0_86, %c0_87] : memref<49x8x256xf32, #tpu.memory_space<vmem>>, vector<1x8x256xf32>
    %191 = vector.shape_cast %190 : vector<1x8x256xf32> to vector<8x256xf32>
    %192 = arith.mulf %189, %191 : vector<8x256xf32>
    %193 = arith.addf %174, %192 : vector<8x256xf32>
    %c254_i32 = arith.constant 254 : i32
    %194 = tpu.dynamic_rotate %68 by %c254_i32 dim 1 : vector<8x256xf32>, i32 -> vector<8x256xf32>
    %c26 = arith.constant 26 : index
    %c0_88 = arith.constant 0 : index
    %c0_89 = arith.constant 0 : index
    %195 = vector.load %arg4[%c26, %c0_88, %c0_89] : memref<49x8x256xf32, #tpu.memory_space<vmem>>, vector<1x8x256xf32>
    %196 = vector.shape_cast %195 : vector<1x8x256xf32> to vector<8x256xf32>
    %197 = arith.mulf %194, %196 : vector<8x256xf32>
    %198 = arith.addf %179, %197 : vector<8x256xf32>
    %c253_i32 = arith.constant 253 : i32
    %199 = tpu.dynamic_rotate %68 by %c253_i32 dim 1 : vector<8x256xf32>, i32 -> vector<8x256xf32>
    %c27 = arith.constant 27 : index
    %c0_90 = arith.constant 0 : index
    %c0_91 = arith.constant 0 : index
    %200 = vector.load %arg4[%c27, %c0_90, %c0_91] : memref<49x8x256xf32, #tpu.memory_space<vmem>>, vector<1x8x256xf32>
    %201 = vector.shape_cast %200 : vector<1x8x256xf32> to vector<8x256xf32>
    %202 = arith.mulf %199, %201 : vector<8x256xf32>
    %203 = arith.addf %184, %202 : vector<8x256xf32>
    %c243_i32 = arith.constant 243 : i32
    %204 = tpu.dynamic_rotate %68 by %c243_i32 dim 1 : vector<8x256xf32>, i32 -> vector<8x256xf32>
    %c28 = arith.constant 28 : index
    %c0_92 = arith.constant 0 : index
    %c0_93 = arith.constant 0 : index
    %205 = vector.load %arg4[%c28, %c0_92, %c0_93] : memref<49x8x256xf32, #tpu.memory_space<vmem>>, vector<1x8x256xf32>
    %206 = vector.shape_cast %205 : vector<1x8x256xf32> to vector<8x256xf32>
    %207 = arith.mulf %204, %206 : vector<8x256xf32>
    %208 = arith.addf %188, %207 : vector<8x256xf32>
    %c242_i32 = arith.constant 242 : i32
    %209 = tpu.dynamic_rotate %68 by %c242_i32 dim 1 : vector<8x256xf32>, i32 -> vector<8x256xf32>
    %c29 = arith.constant 29 : index
    %c0_94 = arith.constant 0 : index
    %c0_95 = arith.constant 0 : index
    %210 = vector.load %arg4[%c29, %c0_94, %c0_95] : memref<49x8x256xf32, #tpu.memory_space<vmem>>, vector<1x8x256xf32>
    %211 = vector.shape_cast %210 : vector<1x8x256xf32> to vector<8x256xf32>
    %212 = arith.mulf %209, %211 : vector<8x256xf32>
    %213 = arith.addf %193, %212 : vector<8x256xf32>
    %c241_i32 = arith.constant 241 : i32
    %214 = tpu.dynamic_rotate %68 by %c241_i32 dim 1 : vector<8x256xf32>, i32 -> vector<8x256xf32>
    %c30 = arith.constant 30 : index
    %c0_96 = arith.constant 0 : index
    %c0_97 = arith.constant 0 : index
    %215 = vector.load %arg4[%c30, %c0_96, %c0_97] : memref<49x8x256xf32, #tpu.memory_space<vmem>>, vector<1x8x256xf32>
    %216 = vector.shape_cast %215 : vector<1x8x256xf32> to vector<8x256xf32>
    %217 = arith.mulf %214, %216 : vector<8x256xf32>
    %218 = arith.addf %198, %217 : vector<8x256xf32>
    %c240_i32 = arith.constant 240 : i32
    %219 = tpu.dynamic_rotate %68 by %c240_i32 dim 1 : vector<8x256xf32>, i32 -> vector<8x256xf32>
    %c31 = arith.constant 31 : index
    %c0_98 = arith.constant 0 : index
    %c0_99 = arith.constant 0 : index
    %220 = vector.load %arg4[%c31, %c0_98, %c0_99] : memref<49x8x256xf32, #tpu.memory_space<vmem>>, vector<1x8x256xf32>
    %221 = vector.shape_cast %220 : vector<1x8x256xf32> to vector<8x256xf32>
    %222 = arith.mulf %219, %221 : vector<8x256xf32>
    %223 = arith.addf %203, %222 : vector<8x256xf32>
    %c239_i32 = arith.constant 239 : i32
    %224 = tpu.dynamic_rotate %68 by %c239_i32 dim 1 : vector<8x256xf32>, i32 -> vector<8x256xf32>
    %c32 = arith.constant 32 : index
    %c0_100 = arith.constant 0 : index
    %c0_101 = arith.constant 0 : index
    %225 = vector.load %arg4[%c32, %c0_100, %c0_101] : memref<49x8x256xf32, #tpu.memory_space<vmem>>, vector<1x8x256xf32>
    %226 = vector.shape_cast %225 : vector<1x8x256xf32> to vector<8x256xf32>
    %227 = arith.mulf %224, %226 : vector<8x256xf32>
    %228 = arith.addf %208, %227 : vector<8x256xf32>
    %c238_i32 = arith.constant 238 : i32
    %229 = tpu.dynamic_rotate %68 by %c238_i32 dim 1 : vector<8x256xf32>, i32 -> vector<8x256xf32>
    %c33 = arith.constant 33 : index
    %c0_102 = arith.constant 0 : index
    %c0_103 = arith.constant 0 : index
    %230 = vector.load %arg4[%c33, %c0_102, %c0_103] : memref<49x8x256xf32, #tpu.memory_space<vmem>>, vector<1x8x256xf32>
    %231 = vector.shape_cast %230 : vector<1x8x256xf32> to vector<8x256xf32>
    %232 = arith.mulf %229, %231 : vector<8x256xf32>
    %233 = arith.addf %213, %232 : vector<8x256xf32>
    %c237_i32 = arith.constant 237 : i32
    %234 = tpu.dynamic_rotate %68 by %c237_i32 dim 1 : vector<8x256xf32>, i32 -> vector<8x256xf32>
    %c34 = arith.constant 34 : index
    %c0_104 = arith.constant 0 : index
    %c0_105 = arith.constant 0 : index
    %235 = vector.load %arg4[%c34, %c0_104, %c0_105] : memref<49x8x256xf32, #tpu.memory_space<vmem>>, vector<1x8x256xf32>
    %236 = vector.shape_cast %235 : vector<1x8x256xf32> to vector<8x256xf32>
    %237 = arith.mulf %234, %236 : vector<8x256xf32>
    %238 = arith.addf %218, %237 : vector<8x256xf32>
    %c227_i32 = arith.constant 227 : i32
    %239 = tpu.dynamic_rotate %68 by %c227_i32 dim 1 : vector<8x256xf32>, i32 -> vector<8x256xf32>
    %c35 = arith.constant 35 : index
    %c0_106 = arith.constant 0 : index
    %c0_107 = arith.constant 0 : index
    %240 = vector.load %arg4[%c35, %c0_106, %c0_107] : memref<49x8x256xf32, #tpu.memory_space<vmem>>, vector<1x8x256xf32>
    %241 = vector.shape_cast %240 : vector<1x8x256xf32> to vector<8x256xf32>
    %242 = arith.mulf %239, %241 : vector<8x256xf32>
    %243 = arith.addf %223, %242 : vector<8x256xf32>
    %c226_i32 = arith.constant 226 : i32
    %244 = tpu.dynamic_rotate %68 by %c226_i32 dim 1 : vector<8x256xf32>, i32 -> vector<8x256xf32>
    %c36 = arith.constant 36 : index
    %c0_108 = arith.constant 0 : index
    %c0_109 = arith.constant 0 : index
    %245 = vector.load %arg4[%c36, %c0_108, %c0_109] : memref<49x8x256xf32, #tpu.memory_space<vmem>>, vector<1x8x256xf32>
    %246 = vector.shape_cast %245 : vector<1x8x256xf32> to vector<8x256xf32>
    %247 = arith.mulf %244, %246 : vector<8x256xf32>
    %248 = arith.addf %228, %247 : vector<8x256xf32>
    %c225_i32 = arith.constant 225 : i32
    %249 = tpu.dynamic_rotate %68 by %c225_i32 dim 1 : vector<8x256xf32>, i32 -> vector<8x256xf32>
    %c37 = arith.constant 37 : index
    %c0_110 = arith.constant 0 : index
    %c0_111 = arith.constant 0 : index
    %250 = vector.load %arg4[%c37, %c0_110, %c0_111] : memref<49x8x256xf32, #tpu.memory_space<vmem>>, vector<1x8x256xf32>
    %251 = vector.shape_cast %250 : vector<1x8x256xf32> to vector<8x256xf32>
    %252 = arith.mulf %249, %251 : vector<8x256xf32>
    %253 = arith.addf %233, %252 : vector<8x256xf32>
    %c224_i32 = arith.constant 224 : i32
    %254 = tpu.dynamic_rotate %68 by %c224_i32 dim 1 : vector<8x256xf32>, i32 -> vector<8x256xf32>
    %c38 = arith.constant 38 : index
    %c0_112 = arith.constant 0 : index
    %c0_113 = arith.constant 0 : index
    %255 = vector.load %arg4[%c38, %c0_112, %c0_113] : memref<49x8x256xf32, #tpu.memory_space<vmem>>, vector<1x8x256xf32>
    %256 = vector.shape_cast %255 : vector<1x8x256xf32> to vector<8x256xf32>
    %257 = arith.mulf %254, %256 : vector<8x256xf32>
    %258 = arith.addf %238, %257 : vector<8x256xf32>
    %c223_i32 = arith.constant 223 : i32
    %259 = tpu.dynamic_rotate %68 by %c223_i32 dim 1 : vector<8x256xf32>, i32 -> vector<8x256xf32>
    %c39 = arith.constant 39 : index
    %c0_114 = arith.constant 0 : index
    %c0_115 = arith.constant 0 : index
    %260 = vector.load %arg4[%c39, %c0_114, %c0_115] : memref<49x8x256xf32, #tpu.memory_space<vmem>>, vector<1x8x256xf32>
    %261 = vector.shape_cast %260 : vector<1x8x256xf32> to vector<8x256xf32>
    %262 = arith.mulf %259, %261 : vector<8x256xf32>
    %263 = arith.addf %243, %262 : vector<8x256xf32>
    %c222_i32 = arith.constant 222 : i32
    %264 = tpu.dynamic_rotate %68 by %c222_i32 dim 1 : vector<8x256xf32>, i32 -> vector<8x256xf32>
    %c40 = arith.constant 40 : index
    %c0_116 = arith.constant 0 : index
    %c0_117 = arith.constant 0 : index
    %265 = vector.load %arg4[%c40, %c0_116, %c0_117] : memref<49x8x256xf32, #tpu.memory_space<vmem>>, vector<1x8x256xf32>
    %266 = vector.shape_cast %265 : vector<1x8x256xf32> to vector<8x256xf32>
    %267 = arith.mulf %264, %266 : vector<8x256xf32>
    %268 = arith.addf %248, %267 : vector<8x256xf32>
    %c221_i32 = arith.constant 221 : i32
    %269 = tpu.dynamic_rotate %68 by %c221_i32 dim 1 : vector<8x256xf32>, i32 -> vector<8x256xf32>
    %c41 = arith.constant 41 : index
    %c0_118 = arith.constant 0 : index
    %c0_119 = arith.constant 0 : index
    %270 = vector.load %arg4[%c41, %c0_118, %c0_119] : memref<49x8x256xf32, #tpu.memory_space<vmem>>, vector<1x8x256xf32>
    %271 = vector.shape_cast %270 : vector<1x8x256xf32> to vector<8x256xf32>
    %272 = arith.mulf %269, %271 : vector<8x256xf32>
    %273 = arith.addf %253, %272 : vector<8x256xf32>
    %c211_i32 = arith.constant 211 : i32
    %274 = tpu.dynamic_rotate %68 by %c211_i32 dim 1 : vector<8x256xf32>, i32 -> vector<8x256xf32>
    %c42 = arith.constant 42 : index
    %c0_120 = arith.constant 0 : index
    %c0_121 = arith.constant 0 : index
    %275 = vector.load %arg4[%c42, %c0_120, %c0_121] : memref<49x8x256xf32, #tpu.memory_space<vmem>>, vector<1x8x256xf32>
    %276 = vector.shape_cast %275 : vector<1x8x256xf32> to vector<8x256xf32>
    %277 = arith.mulf %274, %276 : vector<8x256xf32>
    %278 = arith.addf %258, %277 : vector<8x256xf32>
    %c210_i32 = arith.constant 210 : i32
    %279 = tpu.dynamic_rotate %68 by %c210_i32 dim 1 : vector<8x256xf32>, i32 -> vector<8x256xf32>
    %c43 = arith.constant 43 : index
    %c0_122 = arith.constant 0 : index
    %c0_123 = arith.constant 0 : index
    %280 = vector.load %arg4[%c43, %c0_122, %c0_123] : memref<49x8x256xf32, #tpu.memory_space<vmem>>, vector<1x8x256xf32>
    %281 = vector.shape_cast %280 : vector<1x8x256xf32> to vector<8x256xf32>
    %282 = arith.mulf %279, %281 : vector<8x256xf32>
    %283 = arith.addf %263, %282 : vector<8x256xf32>
    %c209_i32 = arith.constant 209 : i32
    %284 = tpu.dynamic_rotate %68 by %c209_i32 dim 1 : vector<8x256xf32>, i32 -> vector<8x256xf32>
    %c44 = arith.constant 44 : index
    %c0_124 = arith.constant 0 : index
    %c0_125 = arith.constant 0 : index
    %285 = vector.load %arg4[%c44, %c0_124, %c0_125] : memref<49x8x256xf32, #tpu.memory_space<vmem>>, vector<1x8x256xf32>
    %286 = vector.shape_cast %285 : vector<1x8x256xf32> to vector<8x256xf32>
    %287 = arith.mulf %284, %286 : vector<8x256xf32>
    %288 = arith.addf %268, %287 : vector<8x256xf32>
    %c208_i32 = arith.constant 208 : i32
    %289 = tpu.dynamic_rotate %68 by %c208_i32 dim 1 : vector<8x256xf32>, i32 -> vector<8x256xf32>
    %c45 = arith.constant 45 : index
    %c0_126 = arith.constant 0 : index
    %c0_127 = arith.constant 0 : index
    %290 = vector.load %arg4[%c45, %c0_126, %c0_127] : memref<49x8x256xf32, #tpu.memory_space<vmem>>, vector<1x8x256xf32>
    %291 = vector.shape_cast %290 : vector<1x8x256xf32> to vector<8x256xf32>
    %292 = arith.mulf %289, %291 : vector<8x256xf32>
    %293 = arith.addf %273, %292 : vector<8x256xf32>
    %c207_i32 = arith.constant 207 : i32
    %294 = tpu.dynamic_rotate %68 by %c207_i32 dim 1 : vector<8x256xf32>, i32 -> vector<8x256xf32>
    %c46 = arith.constant 46 : index
    %c0_128 = arith.constant 0 : index
    %c0_129 = arith.constant 0 : index
    %295 = vector.load %arg4[%c46, %c0_128, %c0_129] : memref<49x8x256xf32, #tpu.memory_space<vmem>>, vector<1x8x256xf32>
    %296 = vector.shape_cast %295 : vector<1x8x256xf32> to vector<8x256xf32>
    %297 = arith.mulf %294, %296 : vector<8x256xf32>
    %298 = arith.addf %278, %297 : vector<8x256xf32>
    %c206_i32 = arith.constant 206 : i32
    %299 = tpu.dynamic_rotate %68 by %c206_i32 dim 1 : vector<8x256xf32>, i32 -> vector<8x256xf32>
    %c47 = arith.constant 47 : index
    %c0_130 = arith.constant 0 : index
    %c0_131 = arith.constant 0 : index
    %300 = vector.load %arg4[%c47, %c0_130, %c0_131] : memref<49x8x256xf32, #tpu.memory_space<vmem>>, vector<1x8x256xf32>
    %301 = vector.shape_cast %300 : vector<1x8x256xf32> to vector<8x256xf32>
    %302 = arith.mulf %299, %301 : vector<8x256xf32>
    %303 = arith.addf %283, %302 : vector<8x256xf32>
    %c205_i32 = arith.constant 205 : i32
    %304 = tpu.dynamic_rotate %68 by %c205_i32 dim 1 : vector<8x256xf32>, i32 -> vector<8x256xf32>
    %c48 = arith.constant 48 : index
    %c0_132 = arith.constant 0 : index
    %c0_133 = arith.constant 0 : index
    %305 = vector.load %arg4[%c48, %c0_132, %c0_133] : memref<49x8x256xf32, #tpu.memory_space<vmem>>, vector<1x8x256xf32>
    %306 = vector.shape_cast %305 : vector<1x8x256xf32> to vector<8x256xf32>
    %307 = arith.mulf %304, %306 : vector<8x256xf32>
    %308 = arith.addf %288, %307 : vector<8x256xf32>
    %309 = arith.addf %308, %293 : vector<8x256xf32>
    %310 = arith.addf %309, %298 : vector<8x256xf32>
    %311 = arith.addf %310, %303 : vector<8x256xf32>
    %312 = vector.extract_strided_slice %311 {offsets = [0, 0], sizes = [1, 256], strides = [1, 1]} : vector<8x256xf32> to vector<1x256xf32>
    %313 = vector.extract_strided_slice %311 {offsets = [2, 0], sizes = [1, 256], strides = [1, 1]} : vector<8x256xf32> to vector<1x256xf32>
    %314 = arith.addf %312, %313 : vector<1x256xf32>
    %315 = vector.broadcast %2 : f32 to vector<1x256xf32>
    %316 = arith.addf %314, %315 : vector<1x256xf32>
    %317 = arith.negf %316 : vector<1x256xf32>
    %318 = math.exp %317 : vector<1x256xf32>
    %cst_134 = arith.constant 1.000000e+00 : f32
    %319 = vector.broadcast %cst_134 : f32 to vector<1x256xf32>
    %320 = arith.addf %319, %318 : vector<1x256xf32>
    %321 = arith.divf %319, %320 : vector<1x256xf32>
    %322 = vector.broadcast %321 : vector<1x256xf32> to vector<64x256xf32>
    %323 = arith.mulf %30, %322 : vector<64x256xf32>
    %c0_135 = arith.constant 0 : index
    %c0_136 = arith.constant 0 : index
    %c0_137 = arith.constant 0 : index
    %324 = vector.load %arg6[%c0_135, %c0_136, %c0_137] : memref<2x64x256xf32, #tpu.memory_space<vmem>>, vector<1x64x256xf32>
    %325 = vector.shape_cast %324 : vector<1x64x256xf32> to vector<64x256xf32>
    %326 = vector.shape_cast %323 : vector<64x256xf32> to vector<1x64x256xf32>
    tpu.vector_store %arg6[%c0_135, %c0_136, %c0_137], %326 {strides = array<i32>} : memref<2x64x256xf32, #tpu.memory_space<vmem>>, vector<1x64x256xf32>,
    %327 = vector.extract_strided_slice %311 {offsets = [1, 0], sizes = [1, 256], strides = [1, 1]} : vector<8x256xf32> to vector<1x256xf32>
    %328 = vector.extract_strided_slice %311 {offsets = [3, 0], sizes = [1, 256], strides = [1, 1]} : vector<8x256xf32> to vector<1x256xf32>
    %329 = arith.addf %327, %328 : vector<1x256xf32>
    %330 = vector.broadcast %2 : f32 to vector<1x256xf32>
    %331 = arith.addf %329, %330 : vector<1x256xf32>
    %332 = arith.negf %331 : vector<1x256xf32>
    %333 = math.exp %332 : vector<1x256xf32>
    %cst_138 = arith.constant 1.000000e+00 : f32
    %334 = vector.broadcast %cst_138 : f32 to vector<1x256xf32>
    %335 = arith.addf %334, %333 : vector<1x256xf32>
    %336 = arith.divf %334, %335 : vector<1x256xf32>
    %337 = vector.broadcast %336 : vector<1x256xf32> to vector<64x256xf32>
    %338 = arith.mulf %59, %337 : vector<64x256xf32>
    %c1_139 = arith.constant 1 : index
    %c0_140 = arith.constant 0 : index
    %c0_141 = arith.constant 0 : index
    %339 = vector.load %arg6[%c1_139, %c0_140, %c0_141] : memref<2x64x256xf32, #tpu.memory_space<vmem>>, vector<1x64x256xf32>
    %340 = vector.shape_cast %339 : vector<1x64x256xf32> to vector<64x256xf32>
    %341 = vector.shape_cast %338 : vector<64x256xf32> to vector<1x64x256xf32>
    tpu.vector_store %arg6[%c1_139, %c0_140, %c0_141], %341 {strides = array<i32>} : memref<2x64x256xf32, #tpu.memory_space<vmem>>, vector<1x64x256xf32>,
    return
  }
  func.func @transform_0(%arg0: i32) -> (i32, i32, i32) {
    %c0_i32 = arith.constant 0 : i32
    %c0_i32_0 = arith.constant 0 : i32
    %c0_i32_1 = arith.constant 0 : i32
    return %arg0, %c0_i32, %c0_i32_0 : i32, i32, i32
  }
  func.func @transform_1(%arg0: i32) -> (i32, i32) {
    %c0_i32 = arith.constant 0 : i32
    %c0_i32_0 = arith.constant 0 : i32
    %c0_i32_1 = arith.constant 0 : i32
    return %c0_i32, %c0_i32_0 : i32, i32
  }
  func.func @transform_2(%arg0: i32) -> (i32, i32) {
    %c0_i32 = arith.constant 0 : i32
    %c0_i32_0 = arith.constant 0 : i32
    %c0_i32_1 = arith.constant 0 : i32
    return %c0_i32, %c0_i32_0 : i32, i32
  }
  func.func @transform_3(%arg0: i32) -> (i32, i32, i32) {
    %c0_i32 = arith.constant 0 : i32
    %c0_i32_0 = arith.constant 0 : i32
    %c0_i32_1 = arith.constant 0 : i32
    %c0_i32_2 = arith.constant 0 : i32
    return %c0_i32, %c0_i32_0, %c0_i32_1 : i32, i32, i32
  }
  func.func @transform_4(%arg0: i32) -> i32 {
    %c0_i32 = arith.constant 0 : i32
    %c0_i32_0 = arith.constant 0 : i32
    return %c0_i32 : i32
  }
  func.func @transform_5(%arg0: i32) -> (i32, i32, i32) {
    %c0_i32 = arith.constant 0 : i32
    %c0_i32_0 = arith.constant 0 : i32
    %c0_i32_1 = arith.constant 0 : i32
    return %arg0, %c0_i32, %c0_i32_0 : i32, i32, i32
  }
}

</mosaic_0001>

<bundles_post_ra>
// kernel: tpu_custom_call.1
= control target key start
LH: loop header
LB: loop body
LE: loop exit
PB: predicated region body
PF: predicated region fallthrough
CT: control target
= control target key end

     0   :  { %s3021_s0 = inlined_call_operand.hbm [shape: f32[4,64,256], index: 0, kind: input, shape index: {}]   ;;  %s3022_s1 = inlined_call_operand.vmem [shape: f32[64,4], index: 1, kind: input, shape index: {}]   ;;  %s3023_s2 = inlined_call_operand.vmem [shape: f32[64,4], index: 2, kind: input, shape index: {}]   ;;  %s3024_s3 = inlined_call_operand.hbm [shape: f32[49,8,256], index: 3, kind: input, shape index: {}]   ;;  %s3025_s4 = inlined_call_operand.<no memory space> [shape: f32[1], index: 4, kind: input, shape index: {}]   ;;  %s3026_s5 = inlined_call_operand.hbm [shape: f32[4,64,256], index: 5, kind: output, shape index: {}]  }
   0x1   :  { %10 = sst [smem:[#allocation3]] %s3025_s4 }
   0x2   :  { %11 = vsyncpa [#allocation5], 0 }
   0x3   :  { %13 = vsyncpa [#allocation5 + $0x1], 0 }
   0x4   :  { %14 = vsyncpa [#allocation8], 0 }
   0x5   :  { %15 = vsyncpa [#allocation6], 0 }
   0x6   :  { %17 = vsyncpa [#allocation6 + $0x1], 0  ;;  %s2164_s20 = smov 0   ;;  %s2166_s21 = smov 0  }
   0x7   :  { %s2168_s22 = smov 0   ;;  %s2170_s23 = smov 0  }
   0x8 LB: > { %s2185_s4 = sadd.s32 4294967295, %s2073_s23   ;;  %s1707_s24 = sadd.s32 4294967294, %s2073_s23   ;;  %s2073_s23 = sphi %s2170_s23, %s3061_s23   ;;  %s2069_s22 = sphi %s2168_s22, %s3060_s22   ;;  %s2065_s21 = sphi %s2166_s21, %s3059_s21   ;;  %s2061_s20 = sphi %s2164_s20, %s3058_s20  }
   0x9   : > { %p43_p0 = scmp.ne.s32.totalorder %s2065_s21, %s2061_s20  ;;  %p3027_p1 = scmp.eq.s32.totalorder %s2185_s4, 0 }
   0xa   : > { %p157_p3 = scmp.eq.s32.totalorder %s1707_s24, 1  ;;  %p1708_p5 = scmp.ge.s32.totalorder %s2073_s23, 1 }
   0xb   : > { %p2194_p4 = por %p3027_p1, %p43_p0  ;;  %p164_p7 = scmp.lt.s32.totalorder %s2073_s23, 3 }
   0xc   : > { %p2199_p6 = por %p157_p3, %p43_p0  ;;  %s2075_s28 = smov [#allocation7]  }
   0xd   : > { %s3036_s25 = scalar_select %p2194_p4, 1, 0 }
   0xe   : > { %s3037_s26 = scalar_select %p2199_p6, 1, 0 }
   0xf   : > { %p2204_p8 = pnand %p1708_p5, %p164_p7  ;;  %s182_s29 = sshll.u32 %s2075_s28, 4  ;;  %s2208_s29 = int_to_ptr.vmem [resolvable:$true] %s182_s29 }
  0x10   : > { %s2220_s6 = sadd.s32 1, %s2073_s23   ;;  %s30_s7 = sadd.s32 1, %s2069_s22 }
  0x11   : > { %s3038_s27 = scalar_select %p2204_p8, 1, 0 }
  0x12   : > { %p1771_p9 = pneg %p2204_p8  ;;  %s27_s8 = ssub.s32 %s2073_s23, %s2220_s6 }
  0x13   : > { %s1945_s11 = scalar_lea.hbm %s3024_s3, 12544 }
  0x14   : > { %p2215_p11 = pnand %p1771_p9, %p3027_p1  ;;  %p1946_p12 = scmp.ne.s32.totalorder %s3024_s3, %s1945_s11 }
  0x15   : > { %p1952_p5 = scmp.lt.u32.totalorder %s1945_s11, %s3024_s3 }
  0x16   : > { %p1947_p13 = pneg %p2215_p11 }
  0x18   : > { %p1948_p0 = pnand %p1947_p13, %p1946_p12 }
  0x1a   : > { %p1949_p3 = pneg %p1948_p0 }
  0x1c   : > { %p1954_p7 = pnand %p1952_p5, %p1949_p3 }
  0x1e   : > { %1957 = shalt.err (!%p1954_p7)
}
  0x1f   : > { %s1958_s16 = scalar_lea.vmem %s2208_s29, 12544  ;;  %p1966_p2 = scmp.lt.s32.totalorder %s2208_s29, %s2208_s29 }
  0x20   : > { %p1959_p9 = scmp.ne.s32.totalorder %s2208_s29, %s1958_s16  ;;  %p1967_p6 = scmp.lt.s32.totalorder %s1958_s16, %s1958_s16 }
  0x22   : > { %p1961_p10 = pnand %p1959_p9, %p1947_p13  ;;  %p1968_p4 = por %p1967_p6, %p1966_p2 }
  0x24   : > { %p1962_p1 = pneg %p1961_p10 }
  0x26   : > { %p1969_p8 = pnand %p1968_p4, %p1962_p1 }
  0x28   : > { %1972 = shalt.err (!%p1969_p8)
}
  0x29   : > { %s2076_s17 = smov 256   ;;  %s2077_s18 = smov 16  }
  0x2a   : > { %1774 = dma.hbm_to_vmem [thread:$0]  (!%p2215_p11), %s3024_s3, 12544, %s2208_s29, [#allocation8], %s2076_s17, %s2076_s17, %s2077_s18  }
  0x2b   : > { %p28_p1 = scmp.eq.s32.totalorder %s27_s8, 0  ;;  %p37_p2 = scmp.ne.s32.totalorder %s2069_s22, %s2065_s21 }
  0x2c   : > { %p38_p4 = scmp.eq.s32.totalorder %s2073_s23, 0  ;;  %p1784_p6 = scmp.lt.s32.totalorder %s2073_s23, 2 }
  0x2d   : > { %s2254_s28 = scalar_select %p28_p1, %s2069_s22, %s30_s7  }
  0x2e   : > { %p39_p8 = por %p38_p4, %p37_p2  ;;  %p3040_p10 = scmp.eq.s32.totalorder %s2185_s4, 1 }
  0x2f   : > { %s199_s30 = sand.u32 1, %s2069_s22   ;;  %s1760_s10 = sshll.u32 %s2073_s23, 12 }
  0x30   : > { %p2258_p12 = por %p3040_p10, %p37_p2  ;;  %s1711_s11 = sshll.u32 %s199_s30, 8 }
  0x31   : > { %s2267_s14 = scalar_lea.hbm %s3021_s0, %s1760_s10  ;;  %s203_s29 = scalar_lea.vmem [#allocation4], %s1711_s11 }
  0x32   : > { %s211_s7 = sshll.u32 %s203_s29, 4  ;;  %p2269_p11 = pnand %p1784_p6, %p39_p8  ;;  %s2273_s7 = int_to_ptr.vmem [resolvable:$true] %s211_s7 }
  0x33   : > { %s2275_s15 = scalar_lea.sflag [#allocation5], %s199_s30  ;;  %s1973_s16 = scalar_lea.hbm %s2267_s14, 4096 }
  0x34   : > { %p1974_p13 = scmp.ne.s32.totalorder %s2267_s14, %s1973_s16  ;;  %p1975_p0 = pneg %p2269_p11 }
  0x35   : > { %s1978_s10 = scalar_lea.hbm %s3021_s0, 8192  ;;  %p1979_p7 = scmp.lt.u32.totalorder %s2267_s14, %s3021_s0 }
  0x36   : > { %p1976_p3 = pnand %p1975_p0, %p1974_p13  ;;  %p1980_p9 = scmp.lt.u32.totalorder %s1978_s10, %s1973_s16 }
  0x37   : > { %p1982_p2 = scmp.lt.u32.totalorder %s1973_s16, %s2267_s14 }
  0x38   : > { %p1977_p5 = pneg %p1976_p3  ;;  %p1981_p1 = por %p1980_p9, %p1979_p7 }
  0x3a   : > { %p1983_p4 = por %p1982_p2, %p1981_p1 }
  0x3c   : > { %p1984_p6 = pnand %p1983_p4, %p1977_p5 }
  0x3e   : > { %1987 = shalt.err (!%p1984_p6)
}
  0x3f   : > { %s1988_s30 = scalar_lea.vmem %s2273_s7, 4096  ;;  %s2078_s13 = smov [#allocation4]  }
  0x40   : > { %p1989_p8 = scmp.ne.s32.totalorder %s2273_s7, %s1988_s30  ;;  %s1993_s29 = sshll.u32 %s2078_s13, 4  ;;  %s1994_s29 = int_to_ptr.vmem [resolvable:$false] %s1993_s29 }
  0x41   : > { %s1995_s19 = scalar_lea.vmem %s1994_s29, 8192  ;;  %p1996_p3 = scmp.lt.s32.totalorder %s2273_s7, %s1994_s29 }
  0x42   : > { %p1991_p10 = pnand %p1989_p8, %p1975_p0  ;;  %p1997_p7 = scmp.lt.s32.totalorder %s1995_s19, %s1988_s30 }
  0x44   : > { %p1992_p13 = pneg %p1991_p10  ;;  %p1998_p9 = por %p1997_p7, %p1996_p3 }
  0x46   : > { %p1999_p1 = pnand %p1998_p9, %p1992_p13 }
  0x48   : > { %2002 = shalt.err (!%p1999_p1)
}
  0x49   : > { %1778 = dma.hbm_to_vmem [thread:$0]  (!%p2269_p11), %s2267_s14, 4096, %s2273_s7, %s2275_s15, %s2076_s17, %s2076_s17, %s2077_s18  }
  0x4a   : > { %p3043_p0 = scmp.ne.s32.totalorder %s3038_s27, 0 }
  0x4c   : > { %223 = sbr.rel (%p3043_p0) target bundleno = 901 (0x385), region = 40 }
  0x53   : > { %s2309_s16 = sand.u32 1, %s2065_s21   ;;  %p3044_p5 = scmp.ne.s32.totalorder %s3036_s25, 0 }
  0x54   : > { %s1716_s24 = sshll.u32 %s2309_s16, 8  ;;  %s226_s10 = scalar_lea.sflag [#allocation5], %s2309_s16 }
  0x55   : > { %s2315_s8 = scalar_lea.vmem [#allocation4], %s1716_s24 }
  0x56   : > { %2048 = dma.done.wait (%p3044_p5), %s226_s10, 4096  }
  0x57   : > { %2050 = vsyncadd (%p3044_p5), %s226_s10, 4294963200  ;;  %p3045_p11 = scmp.eq.s32.totalorder %s2185_s4, 0 }
  0x59   : > { %2052 = dma.done.wait (%p3045_p11), [#allocation8], 12544   ;;  %p3046_p2 = pmov %p3045_p11 }
  0x5a   : > { %v2326_v0 = vld [vmem:[%s2315_s8 + $0x80] sm:$0xff]  ;;  %v2329_v1 = vld [vmem:[%s2315_s8 + $0x88] sm:$0xff]  ;;  %v2340_v5 = vld [vmem:[%s2315_s8 + $0x90] sm:$0xff]  ;;  %vm385_vm0 = vcmask 31744   ;;  %s2081_s17 = smov 51   ;;  %s2082_s18 = smov 50  }
  0x5b   : > { %2054 = vsyncadd (%p3046_p2), [#allocation8], 4294954752  ;;  %v2332_v2 = vld [vmem:[%s2315_s8] sm:$0xff]  ;;  %v335_v3 = vadd.f32 %v2329_v1, %v2326_v0  ;;  %v2337_v4 = vld [vmem:[%s2315_s8 + $0x8] sm:$0xff]  ;;  %s2083_s14 = smov 49   ;;  %s2084_s7 = smov 48  }
  0x5c   : > { %v2343_v6 = vld [vmem:[%s2315_s8 + $0x98] sm:$0xff]  ;;  %v311_v7 = vadd.f32 %v2337_v4, %v2332_v2  ;;  %v2348_v8 = vld [vmem:[%s2315_s8 + $0x10] sm:$0xff]  ;;  %v2358_v12 = vld [vmem:[%s2315_s8 + $0xa0] sm:$0xff]  ;;  %s2085_s15 = smov 47   ;;  %s2086_s11 = smov 46  }
  0x5d   : > { %v2351_v9 = vld [vmem:[%s2315_s8 + $0x18] sm:$0xff]  ;;  %336 = vadd.xlane.f32.xlu1 %v335_v3  ;;  %v338_v10 = vadd.f32 %v2343_v6, %v2340_v5  ;;  %v2361_v13 = vld [vmem:[%s2315_s8 + $0xa8] sm:$0xff]  ;;  %v2364_v14 = vld [vmem:[%s2315_s8 + $0x20] sm:$0xff]  ;;  %s2087_s12 = smov 45   ;;  %s2088_s30 = smov 35  }
  0x5e   : > { %312 = vadd.xlane.f32.xlu0 %v311_v7  ;;  %v314_v11 = vadd.f32 %v2351_v9, %v2348_v8  ;;  %v2367_v15 = vld [vmem:[%s2315_s8 + $0x28] sm:$0xff]  ;;  %v341_v16 = vadd.f32 %v2361_v13, %v2358_v12  ;;  %v2374_v18 = vld [vmem:[%s2315_s8 + $0xb0] sm:$0xff]  ;;  %v2377_v19 = vld [vmem:[%s2315_s8 + $0xb8] sm:$0xff]  ;;  %s2089_s13 = smov 34   ;;  %s2090_s29 = smov 33  }
  0x5f   : > { %v317_v17 = vadd.f32 %v2367_v15, %v2364_v14  ;;  %v2380_v20 = vld [vmem:[%s2315_s8 + $0x30] sm:$0xff]  ;;  %v2383_v21 = vld [vmem:[%s2315_s8 + $0x38] sm:$0xff]  ;;  %v344_v22 = vadd.f32 %v2377_v19, %v2374_v18  ;;  %v2390_v24 = vld [vmem:[%s2315_s8 + $0xc0] sm:$0xff]  ;;  %s2091_s19 = smov 32   ;;  %s2092_s10 = smov 31  }
  0x60   : > { %v320_v23 = vadd.f32 %v2383_v21, %v2380_v20  ;;  %v2393_v25 = vld [vmem:[%s2315_s8 + $0xc8] sm:$0xff]  ;;  %v2396_v26 = vld [vmem:[%s2315_s8 + $0x40] sm:$0xff]  ;;  %v2406_v30 = vld [vmem:[%s2315_s8 + $0xd0] sm:$0xff]  ;;  %s2094_s25 = smov 29   ;;  %s2095_s27 = smov 19  }
  0x61   : > { %339 = vadd.xlane.f32.xlu1 %v338_v10  ;;  %v2399_v27 = vld [vmem:[%s2315_s8 + $0x48] sm:$0xff]  ;;  %v347_v28 = vadd.f32 %v2393_v25, %v2390_v24  ;;  %v2409_v31 = vld [vmem:[%s2315_s8 + $0xd8] sm:$0xff]  ;;  %v2412_v32 = vld [vmem:[%s2315_s8 + $0x50] sm:$0xff] }
  0x62   : > { %315 = vadd.xlane.f32.xlu0 %v314_v11  ;;  %v323_v29 = vadd.f32 %v2399_v27, %v2396_v26  ;;  %v2415_v33 = vld [vmem:[%s2315_s8 + $0x58] sm:$0xff]  ;;  %v350_v34 = vadd.f32 %v2409_v31, %v2406_v30  ;;  %v2422_v36 = vld [vmem:[%s2315_s8 + $0xe0] sm:$0xff]  ;;  %v2425_v37 = vld [vmem:[%s2315_s8 + $0xe8] sm:$0xff] }
  0x63   : > { %v326_v35 = vadd.f32 %v2415_v33, %v2412_v32  ;;  %v2428_v38 = vld [vmem:[%s2315_s8 + $0x60] sm:$0xff]  ;;  %v2431_v39 = vld [vmem:[%s2315_s8 + $0x68] sm:$0xff]  ;;  %v353_v40 = vadd.f32 %v2425_v37, %v2422_v36  ;;  %v2438_v42 = vld [vmem:[%s2315_s8 + $0xf0] sm:$0xff] }
  0x64   : > { %v329_v41 = vadd.f32 %v2431_v39, %v2428_v38  ;;  %v2441_v43 = vld [vmem:[%s2315_s8 + $0xf8] sm:$0xff]  ;;  %v2444_v44 = vld [vmem:[%s2315_s8 + $0x70] sm:$0xff]  ;;  %v264_v63 = vld [vmem:[%s3022_s1 + $0x10] sm:$0xff] }
  0x65   : > { %342 = vadd.xlane.f32.xlu1 %v341_v16  ;;  %v2447_v45 = vld [vmem:[%s2315_s8 + $0x78] sm:$0xff]  ;;  %v356_v46 = vadd.f32 %v2441_v43, %v2438_v42  ;;  %v262_v62 = vld [vmem:[%s3022_s1] sm:$0xff]  ;;  %s2093_s8 = smov 30  }
  0x66   : > { %318 = vadd.xlane.f32.xlu0 %v317_v17  ;;  %v332_v47 = vadd.f32 %v2447_v45, %v2444_v44  ;;  %v263_v56 = vld [vmem:[%s3022_s1 + $0x8] sm:$0xff]  ;;  %v265_v17 = vld [vmem:[%s3022_s1 + $0x18] sm:$0xff] }
  0x69   : > { %345 = vadd.xlane.f32.xlu1 %v344_v22 }
  0x6a   : > { %321 = vadd.xlane.f32.xlu0 %v320_v23 }
  0x6d   : > { %348 = vadd.xlane.f32.xlu1 %v347_v28 }
  0x6e   : > { %324 = vadd.xlane.f32.xlu0 %v323_v29 }
  0x71   : > { %351 = vadd.xlane.f32.xlu1 %v350_v34 }
  0x72   : > { %327 = vadd.xlane.f32.xlu0 %v326_v35 }
  0x75   : > { %354 = vadd.xlane.f32.xlu1 %v353_v40 }
  0x76   : > { %330 = vadd.xlane.f32.xlu0 %v329_v41  ;;  %v266_v41 = vld [vmem:[%s3022_s1 + $0x20] sm:$0xff] }
  0x79   : > { %357 = vadd.xlane.f32.xlu1 %v356_v46 }
  0x7a   : > { %333 = vadd.xlane.f32.xlu0 %v332_v47 }
  0xea   : > { %v337_v48 = vpop.xlane.xlu1 %336 }
  0xeb   : > { %v313_v49 = vpop.xlane.xlu0 %312  ;;  %v367_v54 = vmul.f32 0.00390625, %v337_v48 }
  0xec   : > { %v359_v59 = vmul.f32 0.00390625, %v313_v49 }
  0xed   : > { %v603_v7 = vmul.f32 %v367_v54, %v262_v62 }
  0xee   : > { %v340_v50 = vpop.xlane.xlu1 %339  ;;  %v377_v28 = vmul.f32 %v359_v59, %v262_v62 }
  0xef   : > { %v316_v51 = vpop.xlane.xlu0 %315  ;;  %v368_v55 = vmul.f32 0.00390625, %v340_v50  ;;  %v611_v47 = vsel %vm385_vm0, %v603_v7, 0.0 }
  0xf0   : > { %v360_v57 = vmul.f32 0.00390625, %v316_v51  ;;  %v386_v54 = vsel %vm385_vm0, %v377_v28, 0.0 }
  0xf1   : > { %v604_v10 = vmul.f32 %v368_v55, %v263_v56 }
  0xf2   : > { %v343_v52 = vpop.xlane.xlu1 %342  ;;  %v378_v16 = vmul.f32 %v360_v57, %v263_v56 }
  0xf3   : > { %v319_v53 = vpop.xlane.xlu0 %318  ;;  %v369_v60 = vmul.f32 0.00390625, %v343_v52  ;;  %v612_v48 = vsel %vm385_vm0, %v604_v10, 0.0 }
  0xf4   : > { %v361_v3 = vmul.f32 0.00390625, %v319_v53  ;;  %v387_v50 = vsel %vm385_vm0, %v378_v16, 0.0  ;;  %v267_v53 = vld [vmem:[%s3022_s1 + $0x28] sm:$0xff]  ;;  %v613_v59 = vadd.f32 %v612_v48, %v611_v47 }
  0xf5   : > { %v605_v29 = vmul.f32 %v369_v60, %v264_v63 }
  0xf6   : > { %v346_v58 = vpop.xlane.xlu1 %345  ;;  %v379_v40 = vmul.f32 %v361_v3, %v264_v63  ;;  %v388_v63 = vadd.f32 %v387_v50, %v386_v54 }
  0xf7   : > { %v322_v61 = vpop.xlane.xlu0 %321  ;;  %v370_v11 = vmul.f32 0.00390625, %v346_v58  ;;  %v614_v55 = vsel %vm385_vm0, %v605_v29, 0.0 }
  0xf8   : > { %v362_v22 = vmul.f32 0.00390625, %v322_v61  ;;  %v389_v60 = vsel %vm385_vm0, %v379_v40, 0.0  ;;  %v615_v10 = vadd.f32 %v614_v55, %v613_v59 }
  0xf9   : > { %v606_v49 = vmul.f32 %v370_v11, %v265_v17 }
  0xfa   : > { %v349_v23 = vpop.xlane.xlu1 %348  ;;  %v380_v51 = vmul.f32 %v362_v22, %v265_v17  ;;  %v268_v22 = vld [vmem:[%s3022_s1 + $0x30] sm:$0xff] }
  0xfb   : > { %v371_v34 = vmul.f32 0.00390625, %v349_v23  ;;  %v325_v35 = vpop.xlane.xlu0 %324  ;;  %v616_v3 = vsel %vm385_vm0, %v606_v49, 0.0  ;;  %v390_v23 = vadd.f32 %v389_v60, %v388_v63 }
  0xfc   : > { %v363_v46 = vmul.f32 0.00390625, %v325_v35  ;;  %v391_v11 = vsel %vm385_vm0, %v380_v51, 0.0  ;;  %v617_v35 = vadd.f32 %v616_v3, %v615_v10 }
  0xfd   : > { %v607_v56 = vmul.f32 %v371_v34, %v266_v41 }
  0xfe   : > { %v352_v52 = vpop.xlane.xlu1 %351  ;;  %v381_v61 = vmul.f32 %v363_v46, %v266_v41  ;;  %v392_v46 = vadd.f32 %v391_v11, %v390_v23 }
  0xff   : > { %v372_v57 = vmul.f32 0.00390625, %v352_v52  ;;  %v328_v58 = vpop.xlane.xlu0 %327  ;;  %v618_v28 = vsel %vm385_vm0, %v607_v56, 0.0 }
 0x100   : > { %v364_v62 = vmul.f32 0.00390625, %v328_v58  ;;  %v393_v40 = vsel %vm385_vm0, %v381_v61, 0.0  ;;  %v619_v49 = vadd.f32 %v618_v28, %v617_v35 }
 0x101   : > { %v608_v7 = vmul.f32 %v372_v57, %v267_v53  ;;  %v394_v54 = vadd.f32 %v393_v40, %v392_v46 }
 0x102   : > { %v382_v16 = vmul.f32 %v364_v62, %v267_v53  ;;  %v355_v17 = vpop.xlane.xlu1 %354  ;;  %v269_v53 = vld [vmem:[%s3022_s1 + $0x38] sm:$0xff] }
 0x103   : > { %v373_v29 = vmul.f32 0.00390625, %v355_v17  ;;  %v331_v34 = vpop.xlane.xlu0 %330  ;;  %v620_v47 = vsel %vm385_vm0, %v608_v7, 0.0 }
 0x104   : > { %v365_v41 = vmul.f32 0.00390625, %v331_v34  ;;  %v395_v50 = vsel %vm385_vm0, %v382_v16, 0.0  ;;  %v621_v58 = vadd.f32 %v620_v47, %v619_v49 }
 0x105   : > { %v609_v48 = vmul.f32 %v373_v29, %v268_v22  ;;  %v396_v61 = vadd.f32 %v395_v50, %v394_v54  ;;  %v271_v50 = vld [vmem:[%s3023_s2 + $0x8] sm:$0xff] }
 0x106   : > { %v383_v51 = vmul.f32 %v365_v41, %v268_v22  ;;  %v358_v52 = vpop.xlane.xlu1 %357 }
 0x107   : > { %v622_v55 = vsel %vm385_vm0, %v609_v48, 0.0  ;;  %v374_v56 = vmul.f32 0.00390625, %v358_v52  ;;  %v334_v57 = vpop.xlane.xlu0 %333 }
 0x108   : > { %v397_v59 = vsel %vm385_vm0, %v383_v51, 0.0  ;;  %v366_v60 = vmul.f32 0.00390625, %v334_v57  ;;  %v623_v63 = vadd.f32 %v622_v55, %v621_v58  ;;  %v270_v51 = vld [vmem:[%s3023_s2] sm:$0xff] }
 0x109   : > { %v610_v62 = vmul.f32 %v374_v56, %v269_v53  ;;  %v398_v7 = vadd.f32 %v397_v59, %v396_v61 }
 0x10a   : > { %v384_v3 = vmul.f32 %v366_v60, %v269_v53  ;;  %v272_v60 = vld [vmem:[%s3023_s2 + $0x10] sm:$0xff] }
 0x10b   : > { %v624_v10 = vsel %vm385_vm0, %v610_v62, 0.0 }
 0x10c   : > { %v625_v11 = vadd.f32 %v624_v10, %v623_v63  ;;  %v399_v16 = vsel %vm385_vm0, %v384_v3, 0.0 }
 0x10d   : > { %v400_v17 = vadd.f32 %v399_v16, %v398_v7  ;;  %v273_v7 = vld [vmem:[%s3023_s2 + $0x18] sm:$0xff] }
 0x10e   : > { %v626_v22 = vrot.slane %v625_v11, 4 }
 0x10f   : > { %v401_v23 = vrot.slane %v400_v17, 4 }
 0x110   : > { %v627_v28 = vadd.f32 %v626_v22, %v625_v11  ;;  %v274_v22 = vld [vmem:[%s3023_s2 + $0x20] sm:$0xff] }
 0x111   : > { %v402_v29 = vadd.f32 %v401_v23, %v400_v17 }
 0x112   : > { %v628_v34 = vrot.slane %v627_v28, 2 }
 0x113   : > { %v403_v35 = vrot.slane %v402_v29, 2 }
 0x114   : > { %v629_v40 = vadd.f32 %v628_v34, %v627_v28 }
 0x115   : > { %v404_v41 = vadd.f32 %v403_v35, %v402_v29  ;;  %v275_v35 = vld [vmem:[%s3023_s2 + $0x28] sm:$0xff] }
 0x116   : > { %v630_v46 = vrot.slane %v629_v40, 1 }
 0x117   : > { %v405_v47 = vrot.slane %v404_v41, 1 }
 0x118   : > { %v631_v48 = vadd.f32 %v630_v46, %v629_v40 }
 0x119   : > { %v406_v49 = vadd.f32 %v405_v47, %v404_v41 }
 0x11a   : > { %v632_v52 = vmax.f32 %v631_v48, 0.0  ;;  %v276_v48 = vld [vmem:[%s3023_s2 + $0x30] sm:$0xff] }
 0x11b   : > { %v407_v53 = vmax.f32 %v406_v49, 0.0 }
 0x11c   : > { %v634_v58 = vmul.f32 %v632_v52, %v271_v50  ;;  %v633_v59 = vmul.f32 %v632_v52, %v270_v51  ;;  %v635_v63 = vmul.f32 %v632_v52, %v272_v60  ;;  %v636_v16 = vmul.f32 %v632_v52, %v273_v7 }
 0x11d   : > { %v409_v54 = vmul.f32 %v407_v53, %v271_v50  ;;  %v408_v55 = vmul.f32 %v407_v53, %v270_v51  ;;  %v410_v3 = vmul.f32 %v407_v53, %v272_v60  ;;  %v411_v17 = vmul.f32 %v407_v53, %v273_v7 }
 0x11e   : > { %v644_v61 = vsel %vm385_vm0, %v634_v58, 0.0  ;;  %v641_v62 = vsel %vm385_vm0, %v633_v59, 0.0  ;;  %v647_v10 = vsel %vm385_vm0, %v635_v63, 0.0  ;;  %v650_v23 = vsel %vm385_vm0, %v636_v16, 0.0 }
 0x11f   : > { %v419_v56 = vsel %vm385_vm0, %v409_v54, 0.0  ;;  %v416_v57 = vsel %vm385_vm0, %v408_v55, 0.0  ;;  %v422_v11 = vsel %vm385_vm0, %v410_v3, 0.0  ;;  %v425_v28 = vsel %vm385_vm0, %v411_v17, 0.0  ;;  %v277_v55 = vld [vmem:[%s3023_s2 + $0x38] sm:$0xff] }
 0x120   : > { %420 = vadd.xlane.f32.xlu1 %v419_v56  ;;  %417 = vadd.xlane.f32.xlu0 %v416_v57  ;;  %v637_v29 = vmul.f32 %v632_v52, %v274_v22  ;;  %v412_v34 = vmul.f32 %v407_v53, %v274_v22  ;;  %v638_v46 = vmul.f32 %v632_v52, %v275_v35 }
 0x121   : > { %v413_v47 = vmul.f32 %v407_v53, %v275_v35  ;;  %v639_v51 = vmul.f32 %v632_v52, %v276_v48  ;;  %v414_v54 = vmul.f32 %v407_v53, %v276_v48  ;;  %v640_v58 = vmul.f32 %v632_v52, %v277_v55 }
 0x122   : > { %v653_v40 = vsel %vm385_vm0, %v637_v29, 0.0  ;;  %v428_v41 = vsel %vm385_vm0, %v412_v34, 0.0  ;;  %v656_v49 = vsel %vm385_vm0, %v638_v46, 0.0  ;;  %v415_v59 = vmul.f32 %v407_v53, %v277_v55 }
 0x123   : > { %v431_v50 = vsel %vm385_vm0, %v413_v47, 0.0  ;;  %v659_v56 = vsel %vm385_vm0, %v639_v51, 0.0  ;;  %v434_v57 = vsel %vm385_vm0, %v414_v54, 0.0  ;;  %v662_v60 = vsel %vm385_vm0, %v640_v58, 0.0 }
 0x124   : > { %645 = vadd.xlane.f32.xlu1 %v644_v61  ;;  %642 = vadd.xlane.f32.xlu0 %v641_v62  ;;  %v437_v61 = vsel %vm385_vm0, %v415_v59, 0.0  ;;  %v2079_v62 = vmov 0.0  }
 0x125   : > { %375 = vst [vmem:[#allocation2] sm:$0xf0] %v2079_v62  ;;  %376 = vst [vmem:[#allocation2 + $0x8] sm:$0xf0] %v2079_v62 }
 0x128   : > { %648 = vadd.xlane.f32.xlu1 %v647_v10  ;;  %423 = vadd.xlane.f32.xlu0 %v422_v11 }
 0x12c   : > { %651 = vadd.xlane.f32.xlu1 %v650_v23  ;;  %426 = vadd.xlane.f32.xlu0 %v425_v28 }
 0x130   : > { %654 = vadd.xlane.f32.xlu1 %v653_v40  ;;  %429 = vadd.xlane.f32.xlu0 %v428_v41 }
 0x134   : > { %657 = vadd.xlane.f32.xlu1 %v656_v49  ;;  %432 = vadd.xlane.f32.xlu0 %v431_v50 }
 0x138   : > { %660 = vadd.xlane.f32.xlu1 %v659_v56  ;;  %435 = vadd.xlane.f32.xlu0 %v434_v57 }
 0x13c   : > { %663 = vadd.xlane.f32.xlu1 %v662_v60  ;;  %438 = vadd.xlane.f32.xlu0 %v437_v61 }
 0x1ad   : > { %v421_v63 = vpop.xlane.xlu1 %420  ;;  %v418_v3 = vpop.xlane.xlu0 %417 }
 0x1ae   : > { %v1720_v7 = vmul.f32 -1.442695, %v421_v63  ;;  %v1719_v10 = vmul.f32 -1.442695, %v418_v3 }
 0x1b0   : > { %1873 = vpow2.f32 %v1720_v7 }
 0x1b1   : > { %v646_v11 = vpop.xlane.xlu1 %645  ;;  %v643_v16 = vpop.xlane.xlu0 %642  ;;  %1875 = vpow2.f32 %v1719_v10 }
 0x1b2   : > { %v1728_v52 = vmul.f32 -1.442695, %v646_v11  ;;  %v1727_v53 = vmul.f32 -1.442695, %v643_v16 }
 0x1b4   : > { %1877 = vpow2.f32 %v1728_v52 }
 0x1b5   : > { %v649_v17 = vpop.xlane.xlu1 %648  ;;  %v424_v22 = vpop.xlane.xlu0 %423  ;;  %1879 = vpow2.f32 %v1727_v53 }
 0x1b6   : > { %v1729_v23 = vmul.f32 -1.442695, %v649_v17  ;;  %v1721_v28 = vmul.f32 -1.442695, %v424_v22 }
 0x1b8   : > { %1881 = vpow2.f32 %v1729_v23 }
 0x1b9   : > { %v652_v29 = vpop.xlane.xlu1 %651  ;;  %v427_v34 = vpop.xlane.xlu0 %426  ;;  %1883 = vpow2.f32 %v1721_v28 }
 0x1ba   : > { %v1730_v35 = vmul.f32 -1.442695, %v652_v29  ;;  %v1874_v40 = vpop.eup %1873  ;;  %v1722_v41 = vmul.f32 -1.442695, %v427_v34 }
 0x1bb   : > { %v1876_v46 = vpop.eup %1875  ;;  %v465_v49 = vadd.f32 1.0, %v1874_v40 }
 0x1bc   : > { %1885 = vpow2.f32 %v1730_v35  ;;  %v464_v55 = vadd.f32 1.0, %v1876_v46 }
 0x1bd   : > { %v655_v47 = vpop.xlane.xlu1 %654  ;;  %v430_v48 = vpop.xlane.xlu0 %429  ;;  %1887 = vpow2.f32 %v1722_v41 }
 0x1be   : > { %v1731_v50 = vmul.f32 -1.442695, %v655_v47  ;;  %v1878_v51 = vpop.eup %1877  ;;  %v1723_v54 = vmul.f32 -1.442695, %v430_v48 }
 0x1bf   : > { %v1880_v58 = vpop.eup %1879  ;;  %v690_v59 = vadd.f32 1.0, %v1878_v51 }
 0x1c0   : > { %1889 = vpow2.f32 %v1731_v50  ;;  %v689_v3 = vadd.f32 1.0, %v1880_v58  ;;  %v3030_v58 = vlaneseq }
 0x1c1   : > { %v658_v56 = vpop.xlane.xlu1 %657  ;;  %v433_v57 = vpop.xlane.xlu0 %432  ;;  %1891 = vrcp.f32 %v465_v49 }
 0x1c2   : > { %v1732_v60 = vmul.f32 -1.442695, %v658_v56  ;;  %1893 = vpow2.f32 %v1723_v54  ;;  %v1724_v61 = vmul.f32 -1.442695, %v433_v57  ;;  %v1882_v62 = vpop.eup %1881  ;;  %v2080_v56 = vmov 1966171168  }
 0x1c3   : > { %1895 = vrcp.f32 %v464_v55  ;;  %v1884_v63 = vpop.eup %1883  ;;  %v691_v53 = vadd.f32 1.0, %v1882_v62  ;;  %v536_v57 = vunpack.c.l.s4 %v2080_v56 }
 0x1c4   : > { %1897 = vpow2.f32 %v1732_v60  ;;  %v466_v17 = vadd.f32 1.0, %v1884_v63 }
 0x1c5   : > { %v661_v7 = vpop.xlane.xlu1 %660  ;;  %v436_v10 = vpop.xlane.xlu0 %435  ;;  %1899 = vrcp.f32 %v690_v59 }
 0x1c6   : > { %v1886_v11 = vpop.eup %1885  ;;  %v1733_v16 = vmul.f32 -1.442695, %v661_v7  ;;  %v1725_v52 = vmul.f32 -1.442695, %v436_v10  ;;  %1901 = vpow2.f32 %v1724_v61 }
 0x1c7   : > { %v692_v22 = vadd.f32 1.0, %v1886_v11  ;;  %v1888_v29 = vpop.eup %1887  ;;  %v537_v11 = vunpack.c.0.s8 %v536_v57 }
 0x1c8   : > { %1903 = vpow2.f32 %v1733_v16  ;;  %v467_v47 = vadd.f32 1.0, %v1888_v29  ;;  %v2537_v16 = vshrl.u32 %v3030_v58, 7 }
 0x1c9   : > { %1905 = vrcp.f32 %v689_v3  ;;  %v664_v23 = vpop.xlane.xlu1 %663  ;;  %v439_v28 = vpop.xlane.xlu0 %438 }
 0x1ca   : > { %1907 = vpow2.f32 %v1725_v52  ;;  %v1734_v34 = vmul.f32 -1.442695, %v664_v23  ;;  %v1890_v35 = vpop.eup %1889  ;;  %v1726_v40 = vmul.f32 -1.442695, %v439_v28 }
 0x1cb   : > { %1909 = vrcp.f32 %v691_v53  ;;  %v1892_v41 = vpop.eup %1891  ;;  %v693_v49 = vadd.f32 1.0, %v1890_v35 }
 0x1cc   : > { %1911 = vrcp.f32 %v466_v17  ;;  %v1894_v46 = vpop.eup %1893  ;;  %v2534_v10 = vmul.f32 %v1892_v41, %v2348_v8 }
 0x1cd   : > { %1913 = vrcp.f32 %v692_v22  ;;  %v1896_v48 = vpop.eup %1895  ;;  %v468_v54 = vadd.f32 1.0, %v1894_v46 }
 0x1ce   : > { %1915 = vpow2.f32 %v1734_v34  ;;  %v1898_v50 = vpop.eup %1897  ;;  %v2540_v53 = vmul.f32 %v1896_v48, %v2332_v2  ;;  %v2555_v2 = vmul.f32 %v1892_v41, %v2351_v9 }
 0x1cf   : > { %1917 = vpow2.f32 %v1726_v40  ;;  %v1900_v51 = vpop.eup %1899  ;;  %v694_v60 = vadd.f32 1.0, %v1898_v50 }
 0x1d0   : > { %v1902_v55 = vpop.eup %1901  ;;  %1919 = vrcp.f32 %v467_v47  ;;  %v2543_v17 = vmul.f32 %v1900_v51, %v2340_v5  ;;  %v2546_v22 = vmul.f32 %v1900_v51, %v2343_v6  ;;  %v2558_v5 = vmul.f32 %v1896_v48, %v2337_v4 }
 0x1d1   : > { %1921 = vrcp.f32 %v693_v49  ;;  %v469_v63 = vadd.f32 1.0, %v1902_v55  ;;  %v2575_v4 = vsub.s32 %v537_v11, %v2537_v16 }
 0x1d2   : > { %v1904_v59 = vpop.eup %1903  ;;  %1923 = vrcp.f32 %v468_v54 }
 0x1d3   : > { %v1906_v61 = vpop.eup %1905  ;;  %v695_v3 = vadd.f32 1.0, %v1904_v59  ;;  %1925 = vrcp.f32 %v694_v60 }
 0x1d4   : > { %v1908_v62 = vpop.eup %1907  ;;  %v2549_v28 = vmul.f32 %v1906_v61, %v2326_v0  ;;  %v2552_v8 = vmul.f32 %v1906_v61, %v2329_v1  ;;  %1927 = vrcp.f32 %v469_v63  ;;  %v504_v1 = vadd.f32 %v2534_v10, %v2540_v53 }
 0x1d5   : > { %v1910_v7 = vpop.eup %1909  ;;  %v470_v29 = vadd.f32 1.0, %v1908_v62  ;;  %1929 = vrcp.f32 %v695_v3 }
 0x1d6   : > { %v1912_v52 = vpop.eup %1911  ;;  %v2561_v35 = vmul.f32 %v1910_v7, %v2358_v12  ;;  %v2564_v0 = vmul.f32 %v1910_v7, %v2361_v13  ;;  %v729_v12 = vadd.f32 %v2543_v17, %v2549_v28  ;;  %v742_v13 = vadd.f32 %v2546_v22, %v2552_v8 }
 0x1d7   : > { %v1914_v23 = vpop.eup %1913  ;;  %v2569_v40 = vmul.f32 %v1912_v52, %v2364_v14  ;;  %v2572_v9 = vmul.f32 %v1912_v52, %v2367_v15  ;;  %1931 = vrcp.f32 %v470_v29  ;;  %v517_v14 = vadd.f32 %v2555_v2, %v2558_v5 }
 0x1d8   : > { %v1916_v34 = vpop.eup %1915  ;;  %v2584_v48 = vmul.f32 %v1914_v23, %v2374_v18  ;;  %v2587_v15 = vmul.f32 %v1914_v23, %v2377_v19  ;;  %v730_v50 = vadd.f32 %v729_v12, %v2561_v35  ;;  %v743_v51 = vadd.f32 %v742_v13, %v2564_v0 }
 0x1d9   : > { %v1918_v6 = vpop.eup %1917  ;;  %v696_v46 = vadd.f32 1.0, %v1916_v34  ;;  %v778_v54 = vmax.f32 %v2549_v28, %v2561_v35  ;;  %v791_v55 = vmax.f32 %v2552_v8, %v2564_v0  ;;  %v505_v57 = vadd.f32 %v504_v1, %v2569_v40 }
 0x1da   : > { %v1920_v41 = vpop.eup %1919  ;;  %v471_v49 = vadd.f32 1.0, %v1918_v6  ;;  %v518_v18 = vadd.f32 %v517_v14, %v2572_v9  ;;  %v556_v60 = vmax.f32 %v2540_v53, %v2569_v40  ;;  %v569_v3 = vmax.f32 %v2558_v5, %v2572_v9 }
 0x1db   : > { %v1922_v47 = vpop.eup %1921  ;;  %v2598_v59 = vmul.f32 %v1920_v41, %v2380_v20  ;;  %v2601_v19 = vmul.f32 %v1920_v41, %v2383_v21  ;;  %1933 = vrcp.f32 %v696_v46  ;;  %v731_v20 = vadd.f32 %v730_v50, %v2584_v48 }
 0x1dc   : > { %v1924_v56 = vpop.eup %1923  ;;  %v2606_v61 = vmul.f32 %v1922_v47, %v2390_v24  ;;  %v2609_v62 = vmul.f32 %v1922_v47, %v2393_v25  ;;  %v744_v7 = vadd.f32 %v743_v51, %v2587_v15  ;;  %1935 = vrcp.f32 %v471_v49 }
 0x1dd   : > { %v1926_v63 = vpop.eup %1925  ;;  %v779_v11 = vmax.f32 %v2543_v17, %v2584_v48  ;;  %v792_v24 = vmax.f32 %v2546_v22, %v2587_v15  ;;  %v2620_v25 = vmul.f32 %v1924_v56, %v2396_v26  ;;  %v2623_v52 = vmul.f32 %v1924_v56, %v2399_v27 }
 0x1de   : > { %v1928_v21 = vpop.eup %1927  ;;  %v506_v29 = vadd.f32 %v505_v57, %v2598_v59  ;;  %v519_v34 = vadd.f32 %v518_v18, %v2601_v19  ;;  %v557_v6 = vmax.f32 %v2534_v10, %v2598_v59  ;;  %v570_v1 = vmax.f32 %v2555_v2, %v2601_v19 }
 0x1df   : > { %v1930_v23 = vpop.eup %1929  ;;  %v732_v41 = vadd.f32 %v731_v20, %v2606_v61  ;;  %v745_v12 = vadd.f32 %v744_v7, %v2609_v62  ;;  %v2634_v26 = vmul.f32 %v1926_v63, %v2406_v30  ;;  %v2637_v27 = vmul.f32 %v1926_v63, %v2409_v31 }
 0x1e0   : > { %v780_v13 = vmax.f32 %v778_v54, %v2606_v61  ;;  %v793_v46 = vmax.f32 %v791_v55, %v2609_v62  ;;  %v2642_v47 = vmul.f32 %v1928_v21, %v2412_v32  ;;  %v2645_v14 = vmul.f32 %v1928_v21, %v2415_v33 }
 0x1e1   : > { %v1932_v49 = vpop.eup %1931  ;;  %v507_v50 = vadd.f32 %v506_v29, %v2620_v25  ;;  %v520_v51 = vadd.f32 %v519_v34, %v2623_v52  ;;  %v2650_v30 = vmul.f32 %v1930_v23, %v2422_v36  ;;  %v2653_v31 = vmul.f32 %v1930_v23, %v2425_v37 }
 0x1e2   : > { %v558_v54 = vmax.f32 %v556_v60, %v2620_v25  ;;  %v571_v55 = vmax.f32 %v569_v3, %v2623_v52  ;;  %v2658_v32 = vmul.f32 %v1932_v49, %v2428_v38  ;;  %v2661_v33 = vmul.f32 %v1932_v49, %v2431_v39 }
 0x1e3   : > { %3047 = vst [vmem:[#allocation13_spill] sm:$0xff] %v2650_v30  ;;  %3048 = vst [vmem:[#allocation14_spill] sm:$0xff] %v2653_v31  ;;  %v733_v56 = vadd.f32 %v732_v41, %v2634_v26  ;;  %v746_v57 = vadd.f32 %v745_v12, %v2637_v27  ;;  %v781_v36 = vmax.f32 %v779_v11, %v2634_v26 }
 0x1e4   : > { %v794_v18 = vmax.f32 %v792_v24, %v2637_v27  ;;  %v508_v37 = vadd.f32 %v507_v50, %v2642_v47  ;;  %v521_v60 = vadd.f32 %v520_v51, %v2645_v14  ;;  %v559_v63 = vmax.f32 %v557_v6, %v2642_v47 }
 0x1e5   : > { %v572_v38 = vmax.f32 %v570_v1, %v2645_v14  ;;  %v1934_v3 = vpop.eup %1933  ;;  %v734_v39 = vadd.f32 %v733_v56, %v2650_v30  ;;  %v747_v20 = vadd.f32 %v746_v57, %v2653_v31  ;;  %v782_v7 = vmax.f32 %v780_v13, %v2650_v30 }
 0x1e6   : > { %v795_v21 = vmax.f32 %v793_v46, %v2653_v31  ;;  %v1936_v11 = vpop.eup %1935  ;;  %v509_v24 = vadd.f32 %v508_v37, %v2658_v32  ;;  %v522_v23 = vadd.f32 %v521_v60, %v2661_v33  ;;  %v2678_v29 = vmul.f32 %v1934_v3, %v2438_v42 }
 0x1e7   : > { %v2681_v34 = vmul.f32 %v1934_v3, %v2441_v43  ;;  %v560_v6 = vmax.f32 %v558_v54, %v2658_v32  ;;  %v573_v1 = vmax.f32 %v571_v55, %v2661_v33  ;;  %v2686_v41 = vmul.f32 %v1936_v11, %v2444_v44 }
 0x1e8   : > { %3049 = vst [vmem:[#allocation15_spill] sm:$0xff] %v2678_v29  ;;  %v2689_v12 = vmul.f32 %v1936_v11, %v2447_v45  ;;  %v735_v13 = vadd.f32 %v734_v39, %v2678_v29  ;;  %v783_v42 = vmax.f32 %v781_v36, %v2678_v29 }
 0x1e9   : > { %3050 = vst [vmem:[#allocation16_spill] sm:$0xff] %v2681_v34  ;;  %v748_v46 = vadd.f32 %v747_v20, %v2681_v34  ;;  %v796_v49 = vmax.f32 %v794_v18, %v2681_v34  ;;  %v510_v43 = vadd.f32 %v509_v24, %v2686_v41  ;;  %v561_v51 = vmax.f32 %v559_v63, %v2686_v41 }
 0x1ea   : > { %v523_v50 = vadd.f32 %v522_v23, %v2689_v12  ;;  %v574_v44 = vmax.f32 %v572_v38, %v2689_v12  ;;  %v736_v54 = vrot.slane %v735_v13, 4  ;;  %v784_v45 = vmax.f32 %v782_v7, %v783_v42 }
 0x1eb   : > { %v749_v55 = vrot.slane %v748_v46, 4  ;;  %v797_v56 = vmax.f32 %v795_v21, %v796_v49  ;;  %v511_v57 = vrot.slane %v510_v43, 4  ;;  %v562_v60 = vmax.f32 %v560_v6, %v561_v51 }
 0x1ec   : > { %v524_v37 = vrot.slane %v523_v50, 4  ;;  %v575_v3 = vmax.f32 %v573_v1, %v574_v44  ;;  %v737_v39 = vadd.f32 %v736_v54, %v735_v13  ;;  %v785_v20 = vrot.slane %v784_v45, 4 }
 0x1ed   : > { %v750_v36 = vadd.f32 %v749_v55, %v748_v46  ;;  %v798_v18 = vrot.slane %v797_v56, 4  ;;  %v512_v11 = vadd.f32 %v511_v57, %v510_v43  ;;  %v563_v58 = vrot.slane %v562_v60, 4 }
 0x1ee   : > { %v525_v24 = vadd.f32 %v524_v37, %v523_v50  ;;  %v576_v23 = vrot.slane %v575_v3, 4  ;;  %v738_v34 = vrot.slane %v737_v39, 2  ;;  %v786_v29 = vmax.f32 %v784_v45, %v785_v20 }
 0x1ef   : > { %v751_v63 = vrot.slane %v750_v36, 2  ;;  %v799_v38 = vmax.f32 %v797_v56, %v798_v18  ;;  %v513_v31 = vrot.slane %v512_v11, 2  ;;  %v564_v7 = vmax.f32 %v562_v60, %v563_v58 }
 0x1f0   : > { %v526_v30 = vrot.slane %v525_v24, 2  ;;  %v577_v21 = vmax.f32 %v575_v3, %v576_v23  ;;  %v739_v42 = vadd.f32 %v738_v34, %v737_v39  ;;  %v787_v6 = vrot.slane %v786_v29, 2 }
 0x1f1   : > { %v752_v49 = vadd.f32 %v751_v63, %v750_v36  ;;  %v800_v1 = vrot.slane %v799_v38, 2  ;;  %v514_v13 = vadd.f32 %v513_v31, %v512_v11  ;;  %v565_v51 = vrot.slane %v564_v7, 2 }
 0x1f2   : > { %v527_v46 = vadd.f32 %v526_v30, %v525_v24  ;;  %v578_v44 = vrot.slane %v577_v21, 2  ;;  %v740_v43 = vrot.slane %v739_v42, 1  ;;  %v788_v54 = vmax.f32 %v786_v29, %v787_v6 }
 0x1f3   : > { %v753_v50 = vrot.slane %v752_v49, 1  ;;  %v801_v55 = vmax.f32 %v799_v38, %v800_v1  ;;  %v515_v57 = vrot.slane %v514_v13, 1  ;;  %v566_v45 = vmax.f32 %v564_v7, %v565_v51 }
 0x1f4   : > { %v528_v37 = vrot.slane %v527_v46, 1  ;;  %v579_v56 = vmax.f32 %v577_v21, %v578_v44  ;;  %v741_v20 = vadd.f32 %v740_v43, %v739_v42  ;;  %v789_v58 = vrot.slane %v788_v54, 1 }
 0x1f5   : > { %v754_v18 = vadd.f32 %v753_v50, %v752_v49  ;;  %v802_v60 = vrot.slane %v801_v55, 1  ;;  %v516_v34 = vadd.f32 %v515_v57, %v514_v13  ;;  %v567_v39 = vrot.slane %v566_v45, 1 }
 0x1f6   : > { %v529_v3 = vadd.f32 %v528_v37, %v527_v46  ;;  %v580_v36 = vrot.slane %v579_v56, 1  ;;  %v755_v31 = vmul.f32 0.015625, %v741_v20  ;;  %v790_v11 = vmax.f32 %v788_v54, %v789_v58 }
 0x1f7   : > { %v756_v30 = vmul.f32 0.015625, %v754_v18  ;;  %v803_v24 = vmax.f32 %v801_v55, %v802_v60  ;;  %v530_v23 = vmul.f32 0.015625, %v516_v34  ;;  %v568_v29 = vmax.f32 %v566_v45, %v567_v39 }
 0x1f8   : > { %v531_v63 = vmul.f32 0.015625, %v529_v3  ;;  %v581_v38 = vmax.f32 %v579_v56, %v580_v36  ;;  %v3051_v13 = vlaneseq }
 0x1f9   : > { %v759_v6 = vcombine.low %v755_v31, %v756_v30  ;;  %v806_v1 = vcombine.low %v790_v11, %v803_v24 }
 0x1fa   : > { %v534_v7 = vcombine.low %v530_v23, %v531_v63  ;;  %v584_v21 = vcombine.low %v568_v29, %v581_v38  ;;  %vm552_vm1 = vcmp.lt.s32.totalorder %v3051_v13, 256  ;;  %v836_v38 = vld [vmem:[#allocation7] sm:$0xff] }
 0x1fb   : > { %v766_v42 = vrot.slane %v759_v6, %v2575_v4  ;;  %v813_v49 = vrot.slane %v806_v1, %v2575_v4  ;;  %v837_v6 = vld [vmem:[#allocation7 + $0x8] sm:$0xff]  ;;  %v884_v1 = vld [vmem:[#allocation7 + $0x40] sm:$0xff] }
 0x1fc   : > { %v541_v46 = vrot.slane %v534_v7, %v2575_v4  ;;  %v591_v51 = vrot.slane %v584_v21, %v2575_v4  ;;  %v885_v7 = vld [vmem:[#allocation7 + $0x48] sm:$0xff] }
 0x1fd   : > { %v773_v44 = vrot.slane %v766_v42, %v2575_v4  ;;  %v820_v43 = vrot.slane %v813_v49, %v2575_v4 }
 0x1fe   : > { %v548_v50 = vrot.slane %v541_v46, %v2575_v4  ;;  %v598_v54 = vrot.slane %v591_v51, %v2575_v4  ;;  %v2769_v4 = vand.u32 127, %v3051_v13 }
 0x1ff   : > { %776 = vst.msk [vmem:[#allocation2 + $0x1] ss:$8 sm:$0x3] %vm552_vm1, %v773_v44  ;;  %823 = vst.msk [vmem:[#allocation2 + $0x3] ss:$8 sm:$0x3] %vm552_vm1, %v820_v43 }
 0x200   : > { %554 = vst.msk [vmem:[#allocation2] ss:$8 sm:$0x3] %vm552_vm1, %v548_v50  ;;  %601 = vst.msk [vmem:[#allocation2 + $0x2] ss:$8 sm:$0x3] %vm552_vm1, %v598_v54 }
 0x201   : > { %vm833_vm2 = vcmp.lt.s32.totalorder %v2769_v4, 51  ;;  %vm844_vm3 = vcmp.lt.s32.totalorder %v2769_v4, 50  ;;  %vm856_vm4 = vcmp.lt.s32.totalorder %v2769_v4, 49  ;;  %vm868_vm5 = vcmp.lt.s32.totalorder %v2769_v4, 48  ;;  %v848_v44 = vld [vmem:[#allocation7 + $0x10] sm:$0xff]  ;;  %v849_v54 = vld [vmem:[#allocation7 + $0x18] sm:$0xff] }
 0x202   : > { %vm880_vm6 = vcmp.lt.s32.totalorder %v2769_v4, 47  ;;  %vm894_vm7 = vcmp.lt.s32.totalorder %v2769_v4, 46  ;;  %vm908_vm8 = vcmp.lt.s32.totalorder %v2769_v4, 45  ;;  %vm922_vm9 = vcmp.lt.s32.totalorder %v2769_v4, 35 }
 0x203   : > { %vm936_vm10 = vcmp.lt.s32.totalorder %v2769_v4, 34  ;;  %vm950_vm11 = vcmp.lt.s32.totalorder %v2769_v4, 33  ;;  %vm964_vm12 = vcmp.lt.s32.totalorder %v2769_v4, 32  ;;  %vm978_vm13 = vcmp.lt.s32.totalorder %v2769_v4, 31 }
 0x204   : > { %vm992_vm14 = vcmp.lt.s32.totalorder %v2769_v4, 30  ;;  %vm1006_vm15 = vcmp.lt.s32.totalorder %v2769_v4, 29  ;;  %vm1020_vm0 = vcmp.lt.s32.totalorder %v2769_v4, 19  ;;  %vm1034_vm1 = vcmp.lt.s32.totalorder %v2769_v4, 18 }
 0x207   : > { %v2708_v55 = vld [vmem:[#allocation2] sm:$0xff]  ;;  %v2710_v57 = vld [vmem:[#allocation2 + $0x8] sm:$0xff] }
 0x208   : > { %829 = vrot.lane.b32.xlu1 %v2710_v57, %s2081_s17  ;;  %827 = vrot.lane.b32.xlu0 %v2708_v55, %s2081_s17  ;;  %s2096_s17 = smov 18  }
 0x20c   : > { %840 = vrot.lane.b32.xlu1 %v2708_v55, %s2082_s18  ;;  %852 = vrot.lane.b32.xlu0 %v2708_v55, %s2083_s14 }
 0x210   : > { %842 = vrot.lane.b32.xlu1 %v2710_v57, %s2082_s18  ;;  %864 = vrot.lane.b32.xlu0 %v2708_v55, %s2084_s7  ;;  %s2097_s18 = smov 17  }
 0x214   : > { %854 = vrot.lane.b32.xlu1 %v2710_v57, %s2083_s14  ;;  %876 = vrot.lane.b32.xlu0 %v2708_v55, %s2085_s15  ;;  %s2098_s14 = smov 16  }
 0x218   : > { %866 = vrot.lane.b32.xlu1 %v2710_v57, %s2084_s7  ;;  %890 = vrot.lane.b32.xlu0 %v2708_v55, %s2086_s11  ;;  %s2099_s7 = smov 13  }
 0x21c   : > { %878 = vrot.lane.b32.xlu1 %v2710_v57, %s2085_s15  ;;  %904 = vrot.lane.b32.xlu0 %v2708_v55, %s2087_s12  ;;  %s2100_s15 = smov 15  }
 0x220   : > { %892 = vrot.lane.b32.xlu1 %v2710_v57, %s2086_s11  ;;  %918 = vrot.lane.b32.xlu0 %v2708_v55, %s2088_s30  ;;  %s2101_s11 = smov 3  }
 0x224   : > { %906 = vrot.lane.b32.xlu1 %v2710_v57, %s2087_s12  ;;  %932 = vrot.lane.b32.xlu0 %v2708_v55, %s2089_s13  ;;  %s2102_s12 = smov 14  }
 0x228   : > { %920 = vrot.lane.b32.xlu1 %v2710_v57, %s2088_s30  ;;  %946 = vrot.lane.b32.xlu0 %v2708_v55, %s2090_s29  ;;  %s2103_s30 = smov 2  }
 0x22c   : > { %934 = vrot.lane.b32.xlu1 %v2710_v57, %s2089_s13  ;;  %960 = vrot.lane.b32.xlu0 %v2708_v55, %s2091_s19  ;;  %s2104_s13 = smov 127  }
 0x230   : > { %948 = vrot.lane.b32.xlu1 %v2710_v57, %s2090_s29  ;;  %974 = vrot.lane.b32.xlu0 %v2708_v55, %s2092_s10  ;;  %s2105_s29 = smov 115  }
 0x234   : > { %962 = vrot.lane.b32.xlu1 %v2710_v57, %s2091_s19  ;;  %988 = vrot.lane.b32.xlu0 %v2708_v55, %s2093_s8  ;;  %s2106_s19 = smov 1  }
 0x238   : > { %976 = vrot.lane.b32.xlu1 %v2710_v57, %s2092_s10  ;;  %1002 = vrot.lane.b32.xlu0 %v2708_v55, %s2094_s25  ;;  %s2107_s10 = smov 126  }
 0x23c   : > { %990 = vrot.lane.b32.xlu1 %v2710_v57, %s2093_s8  ;;  %1016 = vrot.lane.b32.xlu0 %v2708_v55, %s2095_s27  ;;  %s2108_s8 = smov 114  }
 0x240   : > { %1004 = vrot.lane.b32.xlu1 %v2710_v57, %s2094_s25  ;;  %1030 = vrot.lane.b32.xlu0 %v2708_v55, %s2096_s17  ;;  %s2109_s25 = smov 111  }
 0x244   : > { %1018 = vrot.lane.b32.xlu1 %v2710_v57, %s2095_s27  ;;  %1044 = vrot.lane.b32.xlu0 %v2708_v55, %s2097_s18  ;;  %s2110_s27 = smov 125  }
 0x248   : > { %1032 = vrot.lane.b32.xlu1 %v2710_v57, %s2096_s17  ;;  %1058 = vrot.lane.b32.xlu0 %v2708_v55, %s2098_s14  ;;  %s2111_s17 = smov 113  }
 0x24c   : > { %1046 = vrot.lane.b32.xlu1 %v2710_v57, %s2097_s18  ;;  %1100 = vrot.lane.b32.xlu0 %v2708_v55, %s2099_s7  ;;  %s2112_s18 = smov 110  }
 0x250   : > { %1060 = vrot.lane.b32.xlu1 %v2710_v57, %s2098_s14  ;;  %1072 = vrot.lane.b32.xlu0 %v2708_v55, %s2100_s15 }
 0x254   : > { %1102 = vrot.lane.b32.xlu1 %v2710_v57, %s2099_s7  ;;  %1114 = vrot.lane.b32.xlu0 %v2708_v55, %s2101_s11  ;;  %s2113_s7 = smov 98  }
 0x258   : > { %1074 = vrot.lane.b32.xlu1 %v2710_v57, %s2100_s15  ;;  %1086 = vrot.lane.b32.xlu0 %v2708_v55, %s2102_s12  ;;  %s2114_s15 = smov 112  }
 0x25c   : > { %1116 = vrot.lane.b32.xlu1 %v2710_v57, %s2101_s11  ;;  %1128 = vrot.lane.b32.xlu0 %v2708_v55, %s2103_s30  ;;  %s2115_s11 = smov 109  }
 0x260   : > { %1088 = vrot.lane.b32.xlu1 %v2710_v57, %s2102_s12  ;;  %1163 = vrot.lane.b32.xlu0 %v2708_v55, %s2104_s13  ;;  %s2116_s12 = smov 97  }
 0x264   : > { %1130 = vrot.lane.b32.xlu1 %v2710_v57, %s2103_s30  ;;  %1205 = vrot.lane.b32.xlu0 %v2708_v55, %s2105_s29  ;;  %s2117_s30 = smov 94  }
 0x268   : > { %1165 = vrot.lane.b32.xlu1 %v2710_v57, %s2104_s13  ;;  %1142 = vrot.lane.b32.xlu0 %v2708_v55, %s2106_s19  ;;  %s2118_s13 = smov 99  }
 0x26c   : > { %1207 = vrot.lane.b32.xlu1 %v2710_v57, %s2105_s29  ;;  %1177 = vrot.lane.b32.xlu0 %v2708_v55, %s2107_s10  ;;  %s2119_s29 = smov 96  }
 0x270   : > { %1144 = vrot.lane.b32.xlu1 %v2710_v57, %s2106_s19  ;;  %1219 = vrot.lane.b32.xlu0 %v2708_v55, %s2108_s8  ;;  %s2120_s19 = smov 93  }
 0x274   : > { %1179 = vrot.lane.b32.xlu1 %v2710_v57, %s2107_s10  ;;  %1261 = vrot.lane.b32.xlu0 %v2708_v55, %s2109_s25  ;;  %s2121_s10 = smov 81  }
 0x278   : > { %1221 = vrot.lane.b32.xlu1 %v2710_v57, %s2108_s8  ;;  %1191 = vrot.lane.b32.xlu0 %v2708_v55, %s2110_s27  ;;  %s2122_s8 = smov 95  }
 0x27a   : > { %v830_v37 = vpop.permute.xlu1 %829  ;;  %v828_v45 = vpop.permute.xlu0 %827 }
 0x27b   : > { %v834_v56 = vsel %vm833_vm2, %v828_v45, %v830_v37  ;;  %v835_v20 = vsel %vm833_vm2, %v830_v37, %v828_v45  ;;  %v898_v37 = vld [vmem:[#allocation7 + $0x50] sm:$0xff]  ;;  %v899_v45 = vld [vmem:[#allocation7 + $0x58] sm:$0xff]  ;;  %vm1048_vm2 = vcmp.lt.s32.totalorder %v2769_v4, 17 }
 0x27c   : > { %1263 = vrot.lane.b32.xlu1 %v2710_v57, %s2109_s25  ;;  %1233 = vrot.lane.b32.xlu0 %v2708_v55, %s2111_s17  ;;  %v838_v49 = vmul.f32 %v836_v38, %v835_v20  ;;  %v839_v51 = vmul.f32 %v837_v6, %v834_v56  ;;  %s2123_s25 = smov 83  }
 0x27e   : > { %v841_v18 = vpop.permute.xlu1 %840  ;;  %v853_v58 = vpop.permute.xlu0 %852 }
 0x280   : > { %1193 = vrot.lane.b32.xlu1 %v2710_v57, %s2110_s27  ;;  %1275 = vrot.lane.b32.xlu0 %v2708_v55, %s2112_s18  ;;  %s2124_s27 = smov 80  }
 0x282   : > { %v843_v60 = vpop.permute.xlu1 %842  ;;  %v865_v34 = vpop.permute.xlu0 %864 }
 0x283   : > { %v845_v3 = vsel %vm844_vm3, %v841_v18, %v843_v60  ;;  %v846_v39 = vsel %vm844_vm3, %v843_v60, %v841_v18  ;;  %vm1062_vm3 = vcmp.lt.s32.totalorder %v2769_v4, 16 }
 0x284   : > { %1235 = vrot.lane.b32.xlu1 %v2710_v57, %s2111_s17  ;;  %1317 = vrot.lane.b32.xlu0 %v2708_v55, %s2113_s7  ;;  %v850_v60 = vmul.f32 %v848_v44, %v846_v39  ;;  %s2125_s17 = smov 77  }
 0x286   : > { %v855_v36 = vpop.permute.xlu1 %854  ;;  %v877_v31 = vpop.permute.xlu0 %876 }
 0x287   : > { %v857_v30 = vsel %vm856_vm4, %v853_v58, %v855_v36  ;;  %v858_v11 = vsel %vm856_vm4, %v855_v36, %v853_v58  ;;  %vm1104_vm4 = vcmp.lt.s32.totalorder %v2769_v4, 13 }
 0x288   : > { %1277 = vrot.lane.b32.xlu1 %v2710_v57, %s2112_s18  ;;  %1247 = vrot.lane.b32.xlu0 %v2708_v55, %s2114_s15  ;;  %s2126_s18 = smov 82  }
 0x28a   : > { %v867_v24 = vpop.permute.xlu1 %866  ;;  %v891_v23 = vpop.permute.xlu0 %890 }
 0x28b   : > { %v2787_v63 = vsel %vm868_vm5, %v865_v34, %v867_v24  ;;  %v2789_v29 = vsel %vm868_vm5, %v867_v24, %v865_v34  ;;  %v860_v24 = vld [vmem:[#allocation7 + $0x20] sm:$0xff]  ;;  %vm1076_vm5 = vcmp.lt.s32.totalorder %v2769_v4, 15 }
 0x28c   : > { %1319 = vrot.lane.b32.xlu1 %v2710_v57, %s2113_s7  ;;  %1289 = vrot.lane.b32.xlu0 %v2708_v55, %s2115_s11  ;;  %s2127_s7 = smov 79  }
 0x28e   : > { %v879_v21 = vpop.permute.xlu1 %878  ;;  %v905_v42 = vpop.permute.xlu0 %904 }
 0x28f   : > { %v881_v13 = vsel %vm880_vm6, %v877_v31, %v879_v21  ;;  %v882_v46 = vsel %vm880_vm6, %v879_v21, %v877_v31  ;;  %v851_v31 = vmul.f32 %v849_v54, %v845_v3  ;;  %v913_v21 = vld [vmem:[#allocation7 + $0x68] sm:$0xff]  ;;  %v862_v3 = vmul.f32 %v860_v24, %v858_v11 }
 0x290   : > { %v886_v43 = vmul.f32 %v884_v1, %v882_v46  ;;  %v887_v50 = vmul.f32 %v885_v7, %v881_v13  ;;  %1249 = vrot.lane.b32.xlu1 %v2710_v57, %s2114_s15  ;;  %1331 = vrot.lane.b32.xlu0 %v2708_v55, %s2116_s12  ;;  %v861_v1 = vld [vmem:[#allocation7 + $0x28] sm:$0xff]  ;;  %v912_v7 = vld [vmem:[#allocation7 + $0x60] sm:$0xff]  ;;  %s2128_s15 = smov 78   ;;  %vm1118_vm6 = vcmp.lt.s32.totalorder %v2769_v4, 3 }
 0x291   : > { %v863_v44 = vmul.f32 %v861_v1, %v857_v30  ;;  %v940_v1 = vld [vmem:[#allocation7 + $0x80] sm:$0xff] }
 0x292   : > { %v2799_v18 = vadd.f32 %v886_v43, %v838_v49  ;;  %v2801_v20 = vadd.f32 %v887_v50, %v839_v51  ;;  %v893_v58 = vpop.permute.xlu1 %892  ;;  %v919_v56 = vpop.permute.xlu0 %918  ;;  %v872_v43 = vld [vmem:[#allocation7 + $0x30] sm:$0xff] }
 0x293   : > { %v895_v34 = vsel %vm894_vm7, %v891_v23, %v893_v58  ;;  %v896_v36 = vsel %vm894_vm7, %v893_v58, %v891_v23  ;;  %v927_v58 = vld [vmem:[#allocation7 + $0x78] sm:$0xff]  ;;  %v874_v30 = vmul.f32 %v872_v43, %v2789_v29  ;;  %vm1090_vm7 = vcmp.lt.s32.totalorder %v2769_v4, 14 }
 0x294   : > { %v900_v38 = vmul.f32 %v898_v37, %v896_v36  ;;  %v901_v6 = vmul.f32 %v899_v45, %v895_v34  ;;  %1291 = vrot.lane.b32.xlu1 %v2710_v57, %s2115_s11  ;;  %1373 = vrot.lane.b32.xlu0 %v2708_v55, %s2117_s30  ;;  %v873_v37 = vld [vmem:[#allocation7 + $0x38] sm:$0xff]  ;;  %v926_v45 = vld [vmem:[#allocation7 + $0x70] sm:$0xff]  ;;  %s278_s11 = sld [smem:[#allocation3]] }
 0x295   : > { %v875_v24 = vmul.f32 %v873_v37, %v2787_v63  ;;  %v955_v43 = vld [vmem:[#allocation7 + $0x98] sm:$0xff] }
 0x296   : > { %v902_v49 = vadd.f32 %v900_v38, %v850_v60  ;;  %v903_v39 = vadd.f32 %v901_v6, %v851_v31  ;;  %v907_v13 = vpop.permute.xlu1 %906  ;;  %v933_v23 = vpop.permute.xlu0 %932 }
 0x297   : > { %v909_v46 = vsel %vm908_vm8, %v905_v42, %v907_v13  ;;  %v910_v51 = vsel %vm908_vm8, %v907_v13, %v905_v42  ;;  %vm1132_vm8 = vcmp.lt.s32.totalorder %v2769_v4, 2 }
 0x298   : > { %v914_v50 = vmul.f32 %v912_v7, %v910_v51  ;;  %v915_v54 = vmul.f32 %v913_v21, %v909_v46  ;;  %1333 = vrot.lane.b32.xlu1 %v2710_v57, %s2116_s12  ;;  %1303 = vrot.lane.b32.xlu0 %v2708_v55, %s2118_s13  ;;  %v941_v7 = vld [vmem:[#allocation7 + $0x88] sm:$0xff]  ;;  %s2915_s12 = scalar_lea.vmem [#allocation9], %s1716_s24  ;;  %s1762_s24 = sshll.u32 %s2185_s4, 12 }
 0x29a   : > { %v916_v60 = vadd.f32 %v914_v50, %v862_v3  ;;  %v917_v34 = vadd.f32 %v915_v54, %v863_v44  ;;  %v921_v11 = vpop.permute.xlu1 %920  ;;  %v947_v36 = vpop.permute.xlu0 %946  ;;  %v954_v44 = vld [vmem:[#allocation7 + $0x90] sm:$0xff] }
 0x29b   : > { %v923_v42 = vsel %vm922_vm9, %v919_v56, %v921_v11  ;;  %v924_v31 = vsel %vm922_vm9, %v921_v11, %v919_v56  ;;  %vm1167_vm9 = vcmp.lt.s32.totalorder %v2769_v4, 127 }
 0x29c   : > { %v928_v38 = vmul.f32 %v926_v45, %v924_v31  ;;  %v929_v6 = vmul.f32 %v927_v58, %v923_v42  ;;  %1375 = vrot.lane.b32.xlu1 %v2710_v57, %s2117_s30  ;;  %1345 = vrot.lane.b32.xlu0 %v2708_v55, %s2119_s29  ;;  %v968_v42 = vld [vmem:[#allocation7 + $0xa0] sm:$0xff]  ;;  %v969_v31 = vld [vmem:[#allocation7 + $0xa8] sm:$0xff]  ;;  %s1624_s30 = sshll.u32 %s2915_s12, 4  ;;  %s2968_s30 = int_to_ptr.vmem [resolvable:$true] %s1624_s30 }
 0x29e   : > { %v930_v21 = vadd.f32 %v928_v38, %v874_v30  ;;  %v931_v13 = vadd.f32 %v929_v6, %v875_v24  ;;  %v935_v3 = vpop.permute.xlu1 %934  ;;  %v961_v29 = vpop.permute.xlu0 %960 }
 0x29f   : > { %v937_v46 = vsel %vm936_vm10, %v933_v23, %v935_v3  ;;  %v938_v56 = vsel %vm936_vm10, %v935_v3, %v933_v23  ;;  %vm1209_vm10 = vcmp.lt.s32.totalorder %v2769_v4, 115 }
 0x2a0   : > { %v942_v51 = vmul.f32 %v940_v1, %v938_v56  ;;  %v943_v63 = vmul.f32 %v941_v7, %v937_v46  ;;  %1305 = vrot.lane.b32.xlu1 %v2710_v57, %s2118_s13  ;;  %1387 = vrot.lane.b32.xlu0 %v2708_v55, %s2120_s19  ;;  %v983_v46 = vld [vmem:[#allocation7 + $0xb8] sm:$0xff] }
 0x2a2   : > { %v944_v50 = vadd.f32 %v942_v51, %v2799_v18  ;;  %v945_v54 = vadd.f32 %v943_v63, %v2801_v20  ;;  %v949_v37 = vpop.permute.xlu1 %948  ;;  %v975_v45 = vpop.permute.xlu0 %974 }
 0x2a3   : > { %v951_v58 = vsel %vm950_vm11, %v947_v36, %v949_v37  ;;  %v952_v11 = vsel %vm950_vm11, %v949_v37, %v947_v36  ;;  %v982_v36 = vld [vmem:[#allocation7 + $0xb0] sm:$0xff]  ;;  %vm1146_vm11 = vcmp.lt.s32.totalorder %v2769_v4, 1 }
 0x2a4   : > { %v956_v23 = vmul.f32 %v954_v44, %v952_v11  ;;  %v957_v30 = vmul.f32 %v955_v43, %v951_v58  ;;  %1347 = vrot.lane.b32.xlu1 %v2710_v57, %s2119_s29  ;;  %1429 = vrot.lane.b32.xlu0 %v2708_v55, %s2121_s10  ;;  %v997_v58 = vld [vmem:[#allocation7 + $0xc8] sm:$0xff]  ;;  %s2958_s29 = scalar_lea.hbm %s3026_s5, %s1762_s24 }
 0x2a6   : > { %v958_v24 = vadd.f32 %v956_v23, %v902_v49  ;;  %v959_v38 = vadd.f32 %v957_v30, %v903_v39  ;;  %v963_v18 = vpop.permute.xlu1 %962  ;;  %v989_v6 = vpop.permute.xlu0 %988 }
 0x2a7   : > { %v965_v20 = vsel %vm964_vm12, %v961_v29, %v963_v18  ;;  %v966_v1 = vsel %vm964_vm12, %v963_v18, %v961_v29  ;;  %v996_v29 = vld [vmem:[#allocation7 + $0xc0] sm:$0xff]  ;;  %vm1181_vm12 = vcmp.lt.s32.totalorder %v2769_v4, 126 }
 0x2a8   : > { %v970_v7 = vmul.f32 %v968_v42, %v966_v1  ;;  %v971_v3 = vmul.f32 %v969_v31, %v965_v20  ;;  %1389 = vrot.lane.b32.xlu1 %v2710_v57, %s2120_s19  ;;  %1359 = vrot.lane.b32.xlu0 %v2708_v55, %s2122_s8  ;;  %v1011_v20 = vld [vmem:[#allocation7 + $0xd8] sm:$0xff]  ;;  %s1610_s19 = scalar_lea.sflag [#allocation6], %s2309_s16 }
 0x2aa   : > { %v972_v56 = vadd.f32 %v970_v7, %v916_v60  ;;  %v973_v51 = vadd.f32 %v971_v3, %v917_v34  ;;  %v977_v63 = vpop.permute.xlu1 %976  ;;  %v1003_v49 = vpop.permute.xlu0 %1002 }
 0x2ab   : > { %v979_v39 = vsel %vm978_vm13, %v975_v45, %v977_v63  ;;  %v980_v44 = vsel %vm978_vm13, %v977_v63, %v975_v45  ;;  %v1010_v45 = vld [vmem:[#allocation7 + $0xd0] sm:$0xff]  ;;  %vm1223_vm13 = vcmp.lt.s32.totalorder %v2769_v4, 114 }
 0x2ac   : > { %v984_v43 = vmul.f32 %v982_v36, %v980_v44  ;;  %v985_v37 = vmul.f32 %v983_v46, %v979_v39  ;;  %1431 = vrot.lane.b32.xlu1 %v2710_v57, %s2121_s10  ;;  %1401 = vrot.lane.b32.xlu0 %v2708_v55, %s2123_s25  ;;  %v1025_v39 = vld [vmem:[#allocation7 + $0xe8] sm:$0xff]  ;;  %s2003_s10 = scalar_lea.vmem %s2968_s30, 4096 }
 0x2ad   : > { %p2004_p4 = scmp.ne.s32.totalorder %s2968_s30, %s2003_s10 }
 0x2ae   : > { %v986_v11 = vadd.f32 %v984_v43, %v930_v21  ;;  %v987_v23 = vadd.f32 %v985_v37, %v931_v13  ;;  %v991_v30 = vpop.permute.xlu1 %990  ;;  %v1017_v60 = vpop.permute.xlu0 %1016 }
 0x2af   : > { %v993_v34 = vsel %vm992_vm14, %v989_v6, %v991_v30  ;;  %v994_v42 = vsel %vm992_vm14, %v991_v30, %v989_v6  ;;  %v1024_v6 = vld [vmem:[#allocation7 + $0xe0] sm:$0xff]  ;;  %vm1265_vm14 = vcmp.lt.s32.totalorder %v2769_v4, 111  ;;  %p2005_p6 = pnand %p2004_p4, %p2258_p12 }
 0x2b0   : > { %v998_v31 = vmul.f32 %v996_v29, %v994_v42  ;;  %v999_v18 = vmul.f32 %v997_v58, %v993_v34  ;;  %1361 = vrot.lane.b32.xlu1 %v2710_v57, %s2122_s8  ;;  %1443 = vrot.lane.b32.xlu0 %v2708_v55, %s2124_s27  ;;  %v1039_v34 = vld [vmem:[#allocation7 + $0xf8] sm:$0xff]  ;;  %s2129_s8 = smov [#allocation9]  }
 0x2b1   : > { %p2006_p8 = pneg %p2005_p6 }
 0x2b2   : > { %v1000_v1 = vadd.f32 %v998_v31, %v944_v50  ;;  %v1001_v7 = vadd.f32 %v999_v18, %v945_v54  ;;  %v1005_v3 = vpop.permute.xlu1 %1004  ;;  %v1031_v21 = vpop.permute.xlu0 %1030 }
 0x2b3   : > { %v1007_v13 = vsel %vm1006_vm15, %v1003_v49, %v1005_v3  ;;  %v1008_v36 = vsel %vm1006_vm15, %v1005_v3, %v1003_v49  ;;  %v1038_v49 = vld [vmem:[#allocation7 + $0xf0] sm:$0xff]  ;;  %v1052_v3 = vld [vmem:[#allocation7 + $0x100] sm:$0xff]  ;;  %vm1195_vm15 = vcmp.lt.s32.totalorder %v2769_v4, 125 }
 0x2b4   : > { %v1012_v46 = vmul.f32 %v1010_v45, %v1008_v36  ;;  %v1013_v63 = vmul.f32 %v1011_v20, %v1007_v13  ;;  %1403 = vrot.lane.b32.xlu1 %v2710_v57, %s2123_s25  ;;  %1485 = vrot.lane.b32.xlu0 %v2708_v55, %s2125_s17  ;;  %v1053_v13 = vld [vmem:[#allocation7 + $0x108] sm:$0xff]  ;;  %s2007_s25 = sshll.u32 %s2129_s8, 4  ;;  %s2008_s25 = int_to_ptr.vmem [resolvable:$false] %s2007_s25 }
 0x2b5   : > { %p2010_p10 = scmp.lt.s32.totalorder %s2968_s30, %s2008_s25 }
 0x2b6   : > { %v1014_v44 = vadd.f32 %v1012_v46, %v958_v24  ;;  %v1015_v43 = vadd.f32 %v1013_v63, %v959_v38  ;;  %v1019_v37 = vpop.permute.xlu1 %1018  ;;  %v1045_v50 = vpop.permute.xlu0 %1044 }
 0x2b7   : > { %v1021_v54 = vsel %vm1020_vm0, %v1017_v60, %v1019_v37  ;;  %v1022_v29 = vsel %vm1020_vm0, %v1019_v37, %v1017_v60  ;;  %v1066_v37 = vld [vmem:[#allocation7 + $0x110] sm:$0xff]  ;;  %vm1237_vm0 = vcmp.lt.s32.totalorder %v2769_v4, 113 }
 0x2b8   : > { %v1026_v58 = vmul.f32 %v1024_v6, %v1022_v29  ;;  %v1027_v30 = vmul.f32 %v1025_v39, %v1021_v54  ;;  %1445 = vrot.lane.b32.xlu1 %v2710_v57, %s2124_s27  ;;  %1415 = vrot.lane.b32.xlu0 %v2708_v55, %s2126_s18  ;;  %v1067_v54 = vld [vmem:[#allocation7 + $0x118] sm:$0xff]  ;;  %s2009_s27 = scalar_lea.vmem %s2008_s25, 8192 }
 0x2b9   : > { %p2011_p13 = scmp.lt.s32.totalorder %s2009_s27, %s2003_s10 }
 0x2ba   : > { %v2841_v42 = vadd.f32 %v1026_v58, %v972_v56  ;;  %v2843_v31 = vadd.f32 %v1027_v30, %v973_v51  ;;  %v1033_v24 = vpop.permute.xlu1 %1032  ;;  %v1059_v38 = vpop.permute.xlu0 %1058 }
 0x2bb   : > { %v1035_v18 = vsel %vm1034_vm1, %v1031_v21, %v1033_v24  ;;  %v1036_v45 = vsel %vm1034_vm1, %v1033_v24, %v1031_v21  ;;  %vm1279_vm1 = vcmp.lt.s32.totalorder %v2769_v4, 110  ;;  %p2012_p3 = por %p2011_p13, %p2010_p10 }
 0x2bc   : > { %v1040_v60 = vmul.f32 %v1038_v49, %v1036_v45  ;;  %v1041_v20 = vmul.f32 %v1039_v34, %v1035_v18  ;;  %1487 = vrot.lane.b32.xlu1 %v2710_v57, %s2125_s17  ;;  %1457 = vrot.lane.b32.xlu0 %v2708_v55, %s2127_s7  ;;  %v1109_v18 = vld [vmem:[#allocation7 + $0x148] sm:$0xff] }
 0x2bd   : > { %p2013_p7 = pnand %p2012_p3, %p2006_p8 }
 0x2be   : > { %v2848_v36 = vadd.f32 %v1040_v60, %v986_v11  ;;  %v2850_v56 = vadd.f32 %v1041_v20, %v987_v23  ;;  %v1047_v51 = vpop.permute.xlu1 %1046  ;;  %v1101_v46 = vpop.permute.xlu0 %1100 }
 0x2bf   : > { %v1049_v63 = vsel %vm1048_vm2, %v1045_v50, %v1047_v51  ;;  %v1050_v6 = vsel %vm1048_vm2, %v1047_v51, %v1045_v50  ;;  %v1108_v50 = vld [vmem:[#allocation7 + $0x140] sm:$0xff]  ;;  %vm1321_vm2 = vcmp.lt.s32.totalorder %v2769_v4, 98 }
 0x2c0   : > { %v1054_v21 = vmul.f32 %v1052_v3, %v1050_v6  ;;  %v1055_v39 = vmul.f32 %v1053_v13, %v1049_v63  ;;  %1417 = vrot.lane.b32.xlu1 %v2710_v57, %s2126_s18  ;;  %1471 = vrot.lane.b32.xlu0 %v2708_v55, %s2128_s15  ;;  %v1081_v63 = vld [vmem:[#allocation7 + $0x128] sm:$0xff] }
 0x2c2   : > { %v1056_v29 = vadd.f32 %v1054_v21, %v1000_v1  ;;  %v1057_v11 = vadd.f32 %v1055_v39, %v1001_v7  ;;  %v1061_v58 = vpop.permute.xlu1 %1060  ;;  %v1073_v23 = vpop.permute.xlu0 %1072 }
 0x2c3   : > { %v1063_v30 = vsel %vm1062_vm3, %v1059_v38, %v1061_v58  ;;  %v1064_v49 = vsel %vm1062_vm3, %v1061_v58, %v1059_v38  ;;  %v1080_v38 = vld [vmem:[#allocation7 + $0x120] sm:$0xff]  ;;  %vm1251_vm3 = vcmp.lt.s32.totalorder %v2769_v4, 112 }
 0x2c4   : > { %v1068_v34 = vmul.f32 %v1066_v37, %v1064_v49  ;;  %v1069_v24 = vmul.f32 %v1067_v54, %v1063_v30  ;;  %1459 = vrot.lane.b32.xlu1 %v2710_v57, %s2127_s7  ;;  %v1123_v30 = vld [vmem:[#allocation7 + $0x158] sm:$0xff] }
 0x2c6   : > { %v1070_v45 = vadd.f32 %v1068_v34, %v1014_v44  ;;  %v1071_v60 = vadd.f32 %v1069_v24, %v1015_v43  ;;  %v1103_v20 = vpop.permute.xlu1 %1102  ;;  %v1115_v3 = vpop.permute.xlu0 %1114 }
 0x2c7   : > { %v1105_v13 = vsel %vm1104_vm4, %v1101_v46, %v1103_v20  ;;  %v1106_v51 = vsel %vm1104_vm4, %v1103_v20, %v1101_v46  ;;  %v1122_v46 = vld [vmem:[#allocation7 + $0x150] sm:$0xff]  ;;  %vm1293_vm4 = vcmp.lt.s32.totalorder %v2769_v4, 109 }
 0x2c8   : > { %v1110_v1 = vmul.f32 %v1108_v50, %v1106_v51  ;;  %v1111_v7 = vmul.f32 %v1109_v18, %v1105_v13  ;;  %1473 = vrot.lane.b32.xlu1 %v2710_v57, %s2128_s15  ;;  %v1094_v13 = vld [vmem:[#allocation7 + $0x130] sm:$0xff] }
 0x2ca   : > { %v2859_v6 = vadd.f32 %v1110_v1, %v1056_v29  ;;  %v2861_v21 = vadd.f32 %v1111_v7, %v1057_v11  ;;  %v1075_v39 = vpop.permute.xlu1 %1074  ;;  %v1087_v37 = vpop.permute.xlu0 %1086 }
 0x2cb   : > { %v1077_v44 = vsel %vm1076_vm5, %v1073_v23, %v1075_v39  ;;  %v1078_v43 = vsel %vm1076_vm5, %v1075_v39, %v1073_v23  ;;  %v1095_v23 = vld [vmem:[#allocation7 + $0x138] sm:$0xff]  ;;  %vm1335_vm5 = vcmp.lt.s32.totalorder %v2769_v4, 97 }
 0x2cc   : > { %v1082_v54 = vmul.f32 %v1080_v38, %v1078_v43  ;;  %v1083_v58 = vmul.f32 %v1081_v63, %v1077_v44  ;;  %v1137_v43 = vld [vmem:[#allocation7 + $0x168] sm:$0xff] }
 0x2ce   : > { %v1084_v49 = vadd.f32 %v1082_v54, %v2841_v42  ;;  %v1085_v34 = vadd.f32 %v1083_v58, %v2843_v31  ;;  %v1117_v24 = vpop.permute.xlu1 %1116  ;;  %v1129_v50 = vpop.permute.xlu0 %1128  ;;  %v1136_v31 = vld [vmem:[#allocation7 + $0x160] sm:$0xff] }
 0x2cf   : > { %v1119_v29 = vsel %vm1118_vm6, %v1115_v3, %v1117_v24  ;;  %v1120_v18 = vsel %vm1118_vm6, %v1117_v24, %v1115_v3  ;;  %vm1377_vm6 = vcmp.lt.s32.totalorder %v2769_v4, 94 }
 0x2d0   : > { %v1124_v11 = vmul.f32 %v1122_v46, %v1120_v18  ;;  %v1125_v20 = vmul.f32 %v1123_v30, %v1119_v29  ;;  %v1171_v29 = vld [vmem:[#allocation7 + $0x190] sm:$0xff] }
 0x2d2   : > { %v1126_v51 = vadd.f32 %v1124_v11, %v1070_v45  ;;  %v1127_v1 = vadd.f32 %v1125_v20, %v1071_v60  ;;  %v1089_v7 = vpop.permute.xlu1 %1088  ;;  %v1164_v38 = vpop.permute.xlu0 %1163 }
 0x2d3   : > { %v1091_v63 = vsel %vm1090_vm7, %v1087_v37, %v1089_v7  ;;  %v1092_v39 = vsel %vm1090_vm7, %v1089_v7, %v1087_v37  ;;  %v1172_v37 = vld [vmem:[#allocation7 + $0x198] sm:$0xff]  ;;  %vm1307_vm7 = vcmp.lt.s32.totalorder %v2769_v4, 99 }
 0x2d4   : > { %v1096_v44 = vmul.f32 %v1094_v13, %v1092_v39  ;;  %v1097_v42 = vmul.f32 %v1095_v23, %v1091_v63  ;;  %v1157_v63 = vld [vmem:[#allocation7 + $0x180] sm:$0xff] }
 0x2d6   : > { %v1098_v3 = vadd.f32 %v1096_v44, %v2848_v36  ;;  %v1099_v54 = vadd.f32 %v1097_v42, %v2850_v56  ;;  %v1131_v58 = vpop.permute.xlu1 %1130  ;;  %v1206_v46 = vpop.permute.xlu0 %1205  ;;  %v1158_v36 = vld [vmem:[#allocation7 + $0x188] sm:$0xff]  ;;  %v1213_v44 = vld [vmem:[#allocation7 + $0x1c0] sm:$0xff] }
 0x2d7   : > { %v1133_v30 = vsel %vm1132_vm8, %v1129_v50, %v1131_v58  ;;  %v1134_v24 = vsel %vm1132_vm8, %v1131_v58, %v1129_v50  ;;  %v1214_v50 = vld [vmem:[#allocation7 + $0x1c8] sm:$0xff]  ;;  %vm1349_vm8 = vcmp.lt.s32.totalorder %v2769_v4, 96 }
 0x2d8   : > { %v1138_v45 = vmul.f32 %v1136_v31, %v1134_v24  ;;  %v1139_v60 = vmul.f32 %v1137_v43, %v1133_v30  ;;  %v1160_v43 = vmul.f32 %v1158_v36, %v2710_v57 }
 0x2da   : > { %v1140_v18 = vadd.f32 %v1138_v45, %v1084_v49  ;;  %v1141_v11 = vadd.f32 %v1139_v60, %v1085_v34  ;;  %v1166_v20 = vpop.permute.xlu1 %1165  ;;  %v1143_v13 = vpop.permute.xlu0 %1142  ;;  %v1159_v49 = vmul.f32 %v1157_v63, %v2708_v55  ;;  %v1162_v45 = vadd.f32 %v1160_v43, %v2861_v21 }
 0x2db   : > { %v1168_v23 = vsel %vm1167_vm9, %v1164_v38, %v1166_v20  ;;  %v1169_v7 = vsel %vm1167_vm9, %v1166_v20, %v1164_v38  ;;  %v1151_v20 = vld [vmem:[#allocation7 + $0x178] sm:$0xff]  ;;  %vm1391_vm9 = vcmp.lt.s32.totalorder %v2769_v4, 93 }
 0x2dc   : > { %v1173_v39 = vmul.f32 %v1171_v29, %v1168_v23  ;;  %v1174_v56 = vmul.f32 %v1172_v37, %v1169_v7  ;;  %v1161_v38 = vadd.f32 %v1159_v49, %v2859_v6  ;;  %v1150_v37 = vld [vmem:[#allocation7 + $0x170] sm:$0xff] }
 0x2de   : > { %v1175_v42 = vadd.f32 %v1173_v39, %v1126_v51  ;;  %v1176_v31 = vadd.f32 %v1174_v56, %v1127_v1  ;;  %v1208_v58 = vpop.permute.xlu1 %1207  ;;  %v1178_v34 = vpop.permute.xlu0 %1177  ;;  %v1186_v39 = vld [vmem:[#allocation7 + $0x1a8] sm:$0xff] }
 0x2df   : > { %v1210_v30 = vsel %vm1209_vm10, %v1206_v46, %v1208_v58  ;;  %v1211_v24 = vsel %vm1209_vm10, %v1208_v58, %v1206_v46  ;;  %v1185_v46 = vld [vmem:[#allocation7 + $0x1a0] sm:$0xff]  ;;  %vm1433_vm10 = vcmp.lt.s32.totalorder %v2769_v4, 81 }
 0x2e0   : > { %v1215_v60 = vmul.f32 %v1213_v44, %v1210_v30  ;;  %v1216_v29 = vmul.f32 %v1214_v50, %v1211_v24  ;;  %v1227_v30 = vld [vmem:[#allocation7 + $0x1d0] sm:$0xff]  ;;  %v1228_v24 = vld [vmem:[#allocation7 + $0x1d8] sm:$0xff] }
 0x2e2   : > { %v1217_v51 = vadd.f32 %v1215_v60, %v1161_v38  ;;  %v1218_v1 = vadd.f32 %v1216_v29, %v1162_v45  ;;  %v1145_v23 = vpop.permute.xlu1 %1144  ;;  %v1220_v57 = vpop.permute.xlu0 %1219 }
 0x2e3   : > { %v1147_v7 = vsel %vm1146_vm11, %v1143_v13, %v1145_v23  ;;  %v1148_v36 = vsel %vm1146_vm11, %v1145_v23, %v1143_v13  ;;  %vm1363_vm11 = vcmp.lt.s32.totalorder %v2769_v4, 95 }
 0x2e4   : > { %v1152_v55 = vmul.f32 %v1150_v37, %v1148_v36  ;;  %v1153_v63 = vmul.f32 %v1151_v20, %v1147_v7 }
 0x2e6   : > { %v1154_v56 = vadd.f32 %v1152_v55, %v1098_v3  ;;  %v1155_v6 = vadd.f32 %v1153_v63, %v1099_v54  ;;  %v1180_v58 = vpop.permute.xlu1 %1179  ;;  %v1262_v21 = vpop.permute.xlu0 %1261  ;;  %v1269_v3 = vld [vmem:[#allocation7 + $0x200] sm:$0xff]  ;;  %v1270_v54 = vld [vmem:[#allocation7 + $0x208] sm:$0xff] }
 0x2e7   : > { %v1182_v44 = vsel %vm1181_vm12, %v1178_v34, %v1180_v58  ;;  %v1183_v50 = vsel %vm1181_vm12, %v1180_v58, %v1178_v34  ;;  %vm1405_vm12 = vcmp.lt.s32.totalorder %v2769_v4, 83 }
 0x2e8   : > { %v1187_v43 = vmul.f32 %v1185_v46, %v1182_v44  ;;  %v1188_v49 = vmul.f32 %v1186_v39, %v1183_v50 }
 0x2ea   : > { %v1189_v38 = vadd.f32 %v1187_v43, %v1140_v18  ;;  %v1190_v13 = vadd.f32 %v1188_v49, %v1141_v11  ;;  %v1222_v45 = vpop.permute.xlu1 %1221  ;;  %v1192_v60 = vpop.permute.xlu0 %1191  ;;  %v1199_v18 = vld [vmem:[#allocation7 + $0x1b0] sm:$0xff]  ;;  %v1200_v11 = vld [vmem:[#allocation7 + $0x1b8] sm:$0xff] }
 0x2eb   : > { %v1224_v29 = vsel %vm1223_vm13, %v1220_v57, %v1222_v45  ;;  %v1225_v37 = vsel %vm1223_vm13, %v1222_v45, %v1220_v57  ;;  %vm1447_vm13 = vcmp.lt.s32.totalorder %v2769_v4, 80 }
 0x2ec   : > { %v1229_v20 = vmul.f32 %v1227_v30, %v1224_v29  ;;  %v1230_v23 = vmul.f32 %v1228_v24, %v1225_v37 }
 0x2ee   : > { %v1231_v7 = vadd.f32 %v1229_v20, %v1175_v42  ;;  %v1232_v34 = vadd.f32 %v1230_v23, %v1176_v31  ;;  %v1264_v36 = vpop.permute.xlu1 %1263  ;;  %v1234_v55 = vpop.permute.xlu0 %1233  ;;  %v1241_v42 = vld [vmem:[#allocation7 + $0x1e0] sm:$0xff]  ;;  %v1242_v31 = vld [vmem:[#allocation7 + $0x1e8] sm:$0xff] }
 0x2ef   : > { %v1266_v63 = vsel %vm1265_vm14, %v1262_v21, %v1264_v36  ;;  %v1267_v46 = vsel %vm1265_vm14, %v1264_v36, %v1262_v21  ;;  %vm1489_vm14 = vcmp.lt.s32.totalorder %v2769_v4, 77 }
 0x2f0   : > { %v1271_v39 = vmul.f32 %v1269_v3, %v1266_v63  ;;  %v1272_v58 = vmul.f32 %v1270_v54, %v1267_v46 }
 0x2f2   : > { %v1273_v44 = vadd.f32 %v1271_v39, %v1217_v51  ;;  %v1274_v57 = vadd.f32 %v1272_v58, %v1218_v1  ;;  %v1194_v50 = vpop.permute.xlu1 %1193  ;;  %v1276_v43 = vpop.permute.xlu0 %1275  ;;  %v1283_v51 = vld [vmem:[#allocation7 + $0x210] sm:$0xff]  ;;  %v1284_v1 = vld [vmem:[#allocation7 + $0x218] sm:$0xff] }
 0x2f3   : > { %v1196_v49 = vsel %vm1195_vm15, %v1192_v60, %v1194_v50  ;;  %v1197_v30 = vsel %vm1195_vm15, %v1194_v50, %v1192_v60  ;;  %vm1419_vm15 = vcmp.lt.s32.totalorder %v2769_v4, 82 }
 0x2f4   : > { %v1201_v24 = vmul.f32 %v1199_v18, %v1196_v49  ;;  %v1202_v45 = vmul.f32 %v1200_v11, %v1197_v30 }
 0x2f6   : > { %v1203_v29 = vadd.f32 %v1201_v24, %v1154_v56  ;;  %v1204_v21 = vadd.f32 %v1202_v45, %v1155_v6  ;;  %v1236_v37 = vpop.permute.xlu1 %1235  ;;  %v1318_v20 = vpop.permute.xlu0 %1317  ;;  %v1325_v56 = vld [vmem:[#allocation7 + $0x240] sm:$0xff]  ;;  %v1326_v6 = vld [vmem:[#allocation7 + $0x248] sm:$0xff] }
 0x2f7   : > { %v1238_v23 = vsel %vm1237_vm0, %v1234_v55, %v1236_v37  ;;  %v1239_v3 = vsel %vm1237_vm0, %v1236_v37, %v1234_v55  ;;  %vm1461_vm0 = vcmp.lt.s32.totalorder %v2769_v4, 79 }
 0x2f8   : > { %v1243_v54 = vmul.f32 %v1241_v42, %v1238_v23  ;;  %v1244_v36 = vmul.f32 %v1242_v31, %v1239_v3 }
 0x2fa   : > { %v1245_v63 = vadd.f32 %v1243_v54, %v1189_v38  ;;  %v1246_v60 = vadd.f32 %v1244_v36, %v1190_v13  ;;  %v1278_v46 = vpop.permute.xlu1 %1277  ;;  %v1248_v39 = vpop.permute.xlu0 %1247  ;;  %v1255_v38 = vld [vmem:[#allocation7 + $0x1f0] sm:$0xff]  ;;  %v1256_v13 = vld [vmem:[#allocation7 + $0x1f8] sm:$0xff] }
 0x2fb   : > { %v1280_v58 = vsel %vm1279_vm1, %v1276_v43, %v1278_v46  ;;  %v1281_v18 = vsel %vm1279_vm1, %v1278_v46, %v1276_v43  ;;  %vm1475_vm1 = vcmp.lt.s32.totalorder %v2769_v4, 78  ;;  %v1513_v4 = vstv %s278_s11 }
 0x2fc   : > { %v1285_v11 = vmul.f32 %v1283_v51, %v1280_v58  ;;  %v1286_v50 = vmul.f32 %v1284_v1, %v1281_v18 }
 0x2fe   : > { %v1287_v49 = vadd.f32 %v1285_v11, %v1231_v7  ;;  %v1288_v55 = vadd.f32 %v1286_v50, %v1232_v34  ;;  %v1320_v30 = vpop.permute.xlu1 %1319  ;;  %v1290_v24 = vpop.permute.xlu0 %1289  ;;  %v1297_v7 = vld [vmem:[#allocation7 + $0x220] sm:$0xff]  ;;  %v1298_v34 = vld [vmem:[#allocation7 + $0x228] sm:$0xff] }
 0x2ff   : > { %v1322_v45 = vsel %vm1321_vm2, %v1318_v20, %v1320_v30  ;;  %v1323_v42 = vsel %vm1321_vm2, %v1320_v30, %v1318_v20 }
 0x300   : > { %v1327_v31 = vmul.f32 %v1325_v56, %v1322_v45  ;;  %v1328_v37 = vmul.f32 %v1326_v6, %v1323_v42 }
 0x302   : > { %v1329_v23 = vadd.f32 %v1327_v31, %v1273_v44  ;;  %v1330_v43 = vadd.f32 %v1328_v37, %v1274_v57  ;;  %v1250_v3 = vpop.permute.xlu1 %1249  ;;  %v1332_v54 = vpop.permute.xlu0 %1331  ;;  %v1339_v44 = vld [vmem:[#allocation7 + $0x250] sm:$0xff]  ;;  %v1340_v57 = vld [vmem:[#allocation7 + $0x258] sm:$0xff] }
 0x303   : > { %v1252_v36 = vsel %vm1251_vm3, %v1248_v39, %v1250_v3  ;;  %v1253_v51 = vsel %vm1251_vm3, %v1250_v3, %v1248_v39 }
 0x304   : > { %v1257_v1 = vmul.f32 %v1255_v38, %v1252_v36  ;;  %v1258_v46 = vmul.f32 %v1256_v13, %v1253_v51 }
 0x306   : > { %v1259_v58 = vadd.f32 %v1257_v1, %v1203_v29  ;;  %v1260_v20 = vadd.f32 %v1258_v46, %v1204_v21  ;;  %v1292_v18 = vpop.permute.xlu1 %1291  ;;  %v1374_v11 = vpop.permute.xlu0 %1373  ;;  %v1381_v29 = vld [vmem:[#allocation7 + $0x280] sm:$0xff]  ;;  %v1382_v21 = vld [vmem:[#allocation7 + $0x288] sm:$0xff] }
 0x307   : > { %v1294_v50 = vsel %vm1293_vm4, %v1290_v24, %v1292_v18  ;;  %v1295_v56 = vsel %vm1293_vm4, %v1292_v18, %v1290_v24 }
 0x308   : > { %v1299_v6 = vmul.f32 %v1297_v7, %v1294_v50  ;;  %v1300_v30 = vmul.f32 %v1298_v34, %v1295_v56 }
 0x30a   : > { %v1301_v45 = vadd.f32 %v1299_v6, %v1245_v63  ;;  %v1302_v39 = vadd.f32 %v1300_v30, %v1246_v60  ;;  %v1334_v42 = vpop.permute.xlu1 %1333  ;;  %v1304_v31 = vpop.permute.xlu0 %1303  ;;  %v1311_v63 = vld [vmem:[#allocation7 + $0x230] sm:$0xff]  ;;  %v1312_v60 = vld [vmem:[#allocation7 + $0x238] sm:$0xff] }
 0x30b   : > { %v1336_v37 = vsel %vm1335_vm5, %v1332_v54, %v1334_v42  ;;  %v1337_v38 = vsel %vm1335_vm5, %v1334_v42, %v1332_v54 }
 0x30c   : > { %v1341_v13 = vmul.f32 %v1339_v44, %v1336_v37  ;;  %v1342_v3 = vmul.f32 %v1340_v57, %v1337_v38 }
 0x30e   : > { %v1343_v36 = vadd.f32 %v1341_v13, %v1287_v49  ;;  %v1344_v24 = vadd.f32 %v1342_v3, %v1288_v55  ;;  %v1376_v51 = vpop.permute.xlu1 %1375  ;;  %v1346_v1 = vpop.permute.xlu0 %1345  ;;  %v1353_v49 = vld [vmem:[#allocation7 + $0x260] sm:$0xff]  ;;  %v1354_v55 = vld [vmem:[#allocation7 + $0x268] sm:$0xff] }
 0x30f   : > { %v1378_v46 = vsel %vm1377_vm6, %v1374_v11, %v1376_v51  ;;  %v1379_v7 = vsel %vm1377_vm6, %v1376_v51, %v1374_v11 }
 0x310   : > { %v1383_v34 = vmul.f32 %v1381_v29, %v1378_v46  ;;  %v1384_v18 = vmul.f32 %v1382_v21, %v1379_v7 }
 0x312   : > { %v1385_v50 = vadd.f32 %v1383_v34, %v1329_v23  ;;  %v1386_v54 = vadd.f32 %v1384_v18, %v1330_v43  ;;  %v1306_v56 = vpop.permute.xlu1 %1305  ;;  %v1388_v6 = vpop.permute.xlu0 %1387  ;;  %v1395_v23 = vld [vmem:[#allocation7 + $0x290] sm:$0xff]  ;;  %v1396_v43 = vld [vmem:[#allocation7 + $0x298] sm:$0xff] }
 0x313   : > { %v1308_v30 = vsel %vm1307_vm7, %v1304_v31, %v1306_v56  ;;  %v1309_v44 = vsel %vm1307_vm7, %v1306_v56, %v1304_v31 }
 0x314   : > { %v1313_v57 = vmul.f32 %v1311_v63, %v1308_v30  ;;  %v1314_v42 = vmul.f32 %v1312_v60, %v1309_v44 }
 0x316   : > { %v1315_v37 = vadd.f32 %v1313_v57, %v1259_v58  ;;  %v1316_v11 = vadd.f32 %v1314_v42, %v1260_v20  ;;  %v1348_v38 = vpop.permute.xlu1 %1347  ;;  %v1430_v13 = vpop.permute.xlu0 %1429  ;;  %v1437_v58 = vld [vmem:[#allocation7 + $0x2c0] sm:$0xff]  ;;  %v1438_v20 = vld [vmem:[#allocation7 + $0x2c8] sm:$0xff] }
 0x317   : > { %v1350_v3 = vsel %vm1349_vm8, %v1346_v1, %v1348_v38  ;;  %v1351_v29 = vsel %vm1349_vm8, %v1348_v38, %v1346_v1 }
 0x318   : > { %v1355_v21 = vmul.f32 %v1353_v49, %v1350_v3  ;;  %v1356_v51 = vmul.f32 %v1354_v55, %v1351_v29 }
 0x31a   : > { %v1357_v46 = vadd.f32 %v1355_v21, %v1301_v45  ;;  %v1358_v31 = vadd.f32 %v1356_v51, %v1302_v39  ;;  %v1390_v7 = vpop.permute.xlu1 %1389  ;;  %v1360_v34 = vpop.permute.xlu0 %1359  ;;  %v1367_v45 = vld [vmem:[#allocation7 + $0x270] sm:$0xff]  ;;  %v1368_v39 = vld [vmem:[#allocation7 + $0x278] sm:$0xff] }
 0x31b   : > { %v1392_v18 = vsel %vm1391_vm9, %v1388_v6, %v1390_v7  ;;  %v1393_v63 = vsel %vm1391_vm9, %v1390_v7, %v1388_v6 }
 0x31c   : > { %v1397_v60 = vmul.f32 %v1395_v23, %v1392_v18  ;;  %v1398_v56 = vmul.f32 %v1396_v43, %v1393_v63 }
 0x31e   : > { %v1399_v30 = vadd.f32 %v1397_v60, %v1343_v36  ;;  %v1400_v1 = vadd.f32 %v1398_v56, %v1344_v24  ;;  %v1432_v44 = vpop.permute.xlu1 %1431  ;;  %v1402_v57 = vpop.permute.xlu0 %1401  ;;  %v1409_v36 = vld [vmem:[#allocation7 + $0x2a0] sm:$0xff]  ;;  %v1410_v24 = vld [vmem:[#allocation7 + $0x2a8] sm:$0xff] }
 0x31f   : > { %v1434_v42 = vsel %vm1433_vm10, %v1430_v13, %v1432_v44  ;;  %v1435_v49 = vsel %vm1433_vm10, %v1432_v44, %v1430_v13 }
 0x320   : > { %v1439_v55 = vmul.f32 %v1437_v58, %v1434_v42  ;;  %v1440_v38 = vmul.f32 %v1438_v20, %v1435_v49 }
 0x322   : > { %v1441_v3 = vadd.f32 %v1439_v55, %v1385_v50  ;;  %v1442_v6 = vadd.f32 %v1440_v38, %v1386_v54  ;;  %v1362_v29 = vpop.permute.xlu1 %1361  ;;  %v1444_v21 = vpop.permute.xlu0 %1443  ;;  %v1451_v50 = vld [vmem:[#allocation7 + $0x2d0] sm:$0xff]  ;;  %v1452_v54 = vld [vmem:[#allocation7 + $0x2d8] sm:$0xff] }
 0x323   : > { %v1364_v51 = vsel %vm1363_vm11, %v1360_v34, %v1362_v29  ;;  %v1365_v23 = vsel %vm1363_vm11, %v1362_v29, %v1360_v34 }
 0x324   : > { %v1369_v43 = vmul.f32 %v1367_v45, %v1364_v51  ;;  %v1370_v7 = vmul.f32 %v1368_v39, %v1365_v23 }
 0x326   : > { %v1371_v18 = vadd.f32 %v1369_v43, %v1315_v37  ;;  %v1372_v13 = vadd.f32 %v1370_v7, %v1316_v11  ;;  %v1404_v63 = vpop.permute.xlu1 %1403  ;;  %v1486_v44 = vpop.permute.xlu0 %1485  ;;  %v1493_v37 = vld [vmem:[#allocation7 + $0x300] sm:$0xff]  ;;  %v1494_v11 = vld [vmem:[#allocation7 + $0x308] sm:$0xff] }
 0x327   : > { %v1406_v60 = vsel %vm1405_vm12, %v1402_v57, %v1404_v63  ;;  %v1407_v56 = vsel %vm1405_vm12, %v1404_v63, %v1402_v57 }
 0x328   : > { %v1411_v58 = vmul.f32 %v1409_v36, %v1406_v60  ;;  %v1412_v20 = vmul.f32 %v1410_v24, %v1407_v56 }
 0x32a   : > { %v1413_v42 = vadd.f32 %v1411_v58, %v1357_v46  ;;  %v1414_v34 = vadd.f32 %v1412_v20, %v1358_v31  ;;  %v1446_v49 = vpop.permute.xlu1 %1445  ;;  %v1416_v51 = vpop.permute.xlu0 %1415  ;;  %v1423_v46 = vld [vmem:[#allocation7 + $0x2b0] sm:$0xff]  ;;  %v1424_v31 = vld [vmem:[#allocation7 + $0x2b8] sm:$0xff] }
 0x32b   : > { %v1448_v55 = vsel %vm1447_vm13, %v1444_v21, %v1446_v49  ;;  %v1449_v38 = vsel %vm1447_vm13, %v1446_v49, %v1444_v21  ;;  %v1465_v49 = vld [vmem:[#allocation7 + $0x2e0] sm:$0xff] }
 0x32c   : > { %v1453_v45 = vmul.f32 %v1451_v50, %v1448_v55  ;;  %v1454_v39 = vmul.f32 %v1452_v54, %v1449_v38 }
 0x32e   : > { %v1455_v29 = vadd.f32 %v1453_v45, %v1399_v30  ;;  %v1456_v57 = vadd.f32 %v1454_v39, %v1400_v1  ;;  %v1488_v23 = vpop.permute.xlu1 %1487  ;;  %v1458_v1 = vpop.permute.xlu0 %1457 }
 0x32f   : > { %v1490_v43 = vsel %vm1489_vm14, %v1486_v44, %v1488_v23  ;;  %v1491_v7 = vsel %vm1489_vm14, %v1488_v23, %v1486_v44  ;;  %v1466_v44 = vld [vmem:[#allocation7 + $0x2e8] sm:$0xff] }
 0x330   : > { %v1495_v36 = vmul.f32 %v1493_v37, %v1490_v43  ;;  %v1496_v24 = vmul.f32 %v1494_v11, %v1491_v7 }
 0x332   : > { %v1497_v63 = vadd.f32 %v1495_v36, %v1441_v3  ;;  %v1498_v21 = vadd.f32 %v1496_v24, %v1442_v6  ;;  %v1418_v60 = vpop.permute.xlu1 %1417  ;;  %v1479_v6 = vld [vmem:[#allocation7 + $0x2f0] sm:$0xff]  ;;  %v1472_v23 = vpop.permute.xlu0 %1471 }
 0x333   : > { %v1420_v56 = vsel %vm1419_vm15, %v1416_v51, %v1418_v60  ;;  %v1421_v58 = vsel %vm1419_vm15, %v1418_v60, %v1416_v51  ;;  %v1480_v51 = vld [vmem:[#allocation7 + $0x2f8] sm:$0xff] }
 0x334   : > { %v1499_v20 = vadd.f32 %v1497_v63, %v1455_v29  ;;  %v1500_v30 = vadd.f32 %v1498_v21, %v1456_v57  ;;  %v1425_v50 = vmul.f32 %v1423_v46, %v1420_v56  ;;  %v1426_v54 = vmul.f32 %v1424_v31, %v1421_v58 }
 0x336   : > { %v1427_v55 = vadd.f32 %v1425_v50, %v1371_v18  ;;  %v1428_v38 = vadd.f32 %v1426_v54, %v1372_v13  ;;  %v1460_v45 = vpop.permute.xlu1 %1459 }
 0x337   : > { %v1462_v39 = vsel %vm1461_vm0, %v1458_v1, %v1460_v45  ;;  %v1463_v37 = vsel %vm1461_vm0, %v1460_v45, %v1458_v1 }
 0x338   : > { %v1467_v11 = vmul.f32 %v1465_v49, %v1462_v39  ;;  %v1468_v3 = vmul.f32 %v1466_v44, %v1463_v37 }
 0x33a   : > { %v1469_v43 = vadd.f32 %v1467_v11, %v1413_v42  ;;  %v1470_v29 = vadd.f32 %v1468_v3, %v1414_v34  ;;  %v1474_v57 = vpop.permute.xlu1 %1473 }
 0x33b   : > { %v1476_v7 = vsel %vm1475_vm1, %v1472_v23, %v1474_v57  ;;  %v1477_v36 = vsel %vm1475_vm1, %v1474_v57, %v1472_v23 }
 0x33c   : > { %v1501_v24 = vadd.f32 %v1499_v20, %v1469_v43  ;;  %v1502_v46 = vadd.f32 %v1500_v30, %v1470_v29  ;;  %v1481_v18 = vmul.f32 %v1479_v6, %v1476_v7  ;;  %v1482_v13 = vmul.f32 %v1480_v51, %v1477_v36 }
 0x33e   : > { %v1483_v31 = vadd.f32 %v1481_v18, %v1427_v55  ;;  %v1484_v63 = vadd.f32 %v1482_v13, %v1428_v38  ;;  %v1530_v55 = vsub.s32 0, %v2537_v16  ;;  %v1570_v38 = vsub.s32 1, %v2537_v16 }
 0x340   : > { %v1503_v21 = vadd.f32 %v1501_v24, %v1483_v31  ;;  %v1504_v60 = vadd.f32 %v1502_v46, %v1484_v63 }
 0x342   : > { %v1507_v56 = vrot.slane %v1503_v21, 2  ;;  %v1508_v58 = vrot.slane %v1504_v60, 2 }
 0x344   : > { %v1511_v1 = vadd.f32 %v1507_v56, %v1503_v21  ;;  %v1512_v50 = vadd.f32 %v1508_v58, %v1504_v60 }
 0x346   : > { %v1514_v54 = vadd.f32 %v1513_v4, %v1511_v1  ;;  %v1515_v42 = vadd.f32 %v1513_v4, %v1512_v50 }
 0x348   : > { %v1735_v34 = vmul.f32 -1.442695, %v1514_v54  ;;  %v1736_v49 = vmul.f32 -1.442695, %v1515_v42 }
 0x34a   : > { %1937 = vpow2.f32 %v1735_v34 }
 0x34b   : > { %1939 = vpow2.f32 %v1736_v49 }
 0x354   : > { %v1938_v44 = vpop.eup %1937 }
 0x355   : > { %v1940_v20 = vpop.eup %1939  ;;  %v1522_v30 = vadd.f32 1.0, %v1938_v44 }
 0x356   : > { %v1523_v45 = vadd.f32 1.0, %v1940_v20 }
 0x357   : > { %1941 = vrcp.f32 %v1522_v30 }
 0x358   : > { %1943 = vrcp.f32 %v1523_v45 }
 0x361   : > { %v1942_v39 = vpop.eup %1941 }
 0x362   : > { %v1944_v37 = vpop.eup %1943  ;;  %v1531_v11 = vrot.slane %v1942_v39, %v1530_v55  ;;  %v1571_v6 = vrot.slane %v1942_v39, %v1570_v38 }
 0x363   : > { %v1535_v3 = vrot.slane %v1944_v37, %v1530_v55  ;;  %v1575_v51 = vrot.slane %v1944_v37, %v1570_v38 }
 0x364   : > { %v1536_v23 = vmul.f32 %v1531_v11, %v2540_v53  ;;  %v1538_v43 = vmul.f32 %v1531_v11, %v2534_v10  ;;  %v1540_v29 = vmul.f32 %v1531_v11, %v2569_v40  ;;  %v1542_v57 = vmul.f32 %v1531_v11, %v2598_v59 }
 0x365   : > { %v1537_v7 = vmul.f32 %v1535_v3, %v2558_v5  ;;  %v1539_v36 = vmul.f32 %v1535_v3, %v2555_v2  ;;  %v1541_v16 = vmul.f32 %v1535_v3, %v2572_v9  ;;  %v1543_v24 = vmul.f32 %v1535_v3, %v2601_v19 }
 0x366   : > { %v1544_v46 = vmul.f32 %v1531_v11, %v2620_v25  ;;  %v1545_v18 = vmul.f32 %v1535_v3, %v2623_v52  ;;  %v1546_v53 = vmul.f32 %v1531_v11, %v2642_v47  ;;  %v1547_v10 = vmul.f32 %v1535_v3, %v2645_v14  ;;  %1552 = vst [vmem:[%s2915_s12] sm:$0xff] %v1536_v23 }
 0x367   : > { %1554 = vst [vmem:[%s2915_s12 + $0x10] sm:$0xff] %v1538_v43  ;;  %1556 = vst [vmem:[%s2915_s12 + $0x20] sm:$0xff] %v1540_v29  ;;  %v1548_v2 = vmul.f32 %v1531_v11, %v2658_v32  ;;  %v1549_v5 = vmul.f32 %v1535_v3, %v2661_v33  ;;  %v1550_v40 = vmul.f32 %v1531_v11, %v2686_v41 }
 0x368   : > { %1558 = vst [vmem:[%s2915_s12 + $0x30] sm:$0xff] %v1542_v57  ;;  %v1551_v9 = vmul.f32 %v1535_v3, %v2689_v12  ;;  %1553 = vst [vmem:[%s2915_s12 + $0x8] sm:$0xff] %v1537_v7  ;;  %v1576_v59 = vmul.f32 %v1571_v6, %v2549_v28  ;;  %v1577_v19 = vmul.f32 %v1575_v51, %v2552_v8 }
 0x369   : > { %1555 = vst [vmem:[%s2915_s12 + $0x18] sm:$0xff] %v1539_v36  ;;  %1557 = vst [vmem:[%s2915_s12 + $0x28] sm:$0xff] %v1541_v16  ;;  %v1578_v25 = vmul.f32 %v1571_v6, %v2543_v17  ;;  %v1579_v52 = vmul.f32 %v1575_v51, %v2546_v22  ;;  %v1580_v47 = vmul.f32 %v1571_v6, %v2561_v35  ;;  %v3052_v35 = vld [vmem:[#allocation13_spill] sm:$0xff] }
 0x36a   : > { %1559 = vst [vmem:[%s2915_s12 + $0x38] sm:$0xff] %v1543_v24  ;;  %1560 = vst [vmem:[%s2915_s12 + $0x40] sm:$0xff] %v1544_v46  ;;  %v1581_v14 = vmul.f32 %v1575_v51, %v2564_v0  ;;  %v1582_v28 = vmul.f32 %v1571_v6, %v2584_v48  ;;  %v1583_v17 = vmul.f32 %v1575_v51, %v2587_v15  ;;  %v3053_v48 = vld [vmem:[#allocation14_spill] sm:$0xff] }
 0x36b   : > { %1561 = vst [vmem:[%s2915_s12 + $0x48] sm:$0xff] %v1545_v18  ;;  %1562 = vst [vmem:[%s2915_s12 + $0x50] sm:$0xff] %v1546_v53  ;;  %v1584_v22 = vmul.f32 %v1571_v6, %v2606_v61  ;;  %v1585_v8 = vmul.f32 %v1575_v51, %v2609_v62  ;;  %v1586_v32 = vmul.f32 %v1571_v6, %v2634_v26  ;;  %v3054_v61 = vld [vmem:[#allocation15_spill] sm:$0xff]  ;;  %v3055_v26 = vld [vmem:[#allocation16_spill] sm:$0xff] }
 0x36c   : > { %1563 = vst [vmem:[%s2915_s12 + $0x58] sm:$0xff] %v1547_v10  ;;  %1564 = vst [vmem:[%s2915_s12 + $0x60] sm:$0xff] %v1548_v2  ;;  %v1587_v33 = vmul.f32 %v1575_v51, %v2637_v27  ;;  %v1588_v0 = vmul.f32 %v1571_v6, %v3052_v35  ;;  %v1589_v15 = vmul.f32 %v1575_v51, %v3053_v48 }
 0x36d   : > { %1565 = vst [vmem:[%s2915_s12 + $0x68] sm:$0xff] %v1549_v5  ;;  %1566 = vst [vmem:[%s2915_s12 + $0x70] sm:$0xff] %v1550_v40  ;;  %v1590_v62 = vmul.f32 %v1571_v6, %v3054_v61  ;;  %v1591_v27 = vmul.f32 %v1575_v51, %v3055_v26 }
 0x36e   : > { %1567 = vst [vmem:[%s2915_s12 + $0x78] sm:$0xff] %v1551_v9  ;;  %1737 = vst [vmem:[%s2915_s12 + $0x80] sm:$0xff] %v1576_v59 }
 0x36f   : > { %1738 = vst [vmem:[%s2915_s12 + $0x88] sm:$0xff] %v1577_v19  ;;  %1739 = vst [vmem:[%s2915_s12 + $0x90] sm:$0xff] %v1578_v25 }
 0x370   : > { %1740 = vst [vmem:[%s2915_s12 + $0x98] sm:$0xff] %v1579_v52  ;;  %1741 = vst [vmem:[%s2915_s12 + $0xa0] sm:$0xff] %v1580_v47 }
 0x371   : > { %1742 = vst [vmem:[%s2915_s12 + $0xa8] sm:$0xff] %v1581_v14  ;;  %1743 = vst [vmem:[%s2915_s12 + $0xb0] sm:$0xff] %v1582_v28 }
 0x372   : > { %1744 = vst [vmem:[%s2915_s12 + $0xb8] sm:$0xff] %v1583_v17  ;;  %1745 = vst [vmem:[%s2915_s12 + $0xc0] sm:$0xff] %v1584_v22 }
 0x373   : > { %1746 = vst [vmem:[%s2915_s12 + $0xc8] sm:$0xff] %v1585_v8  ;;  %1747 = vst [vmem:[%s2915_s12 + $0xd0] sm:$0xff] %v1586_v32 }
 0x374   : > { %1748 = vst [vmem:[%s2915_s12 + $0xd8] sm:$0xff] %v1587_v33  ;;  %1749 = vst [vmem:[%s2915_s12 + $0xe0] sm:$0xff] %v1588_v0 }
 0x375   : > { %1750 = vst [vmem:[%s2915_s12 + $0xe8] sm:$0xff] %v1589_v15  ;;  %1751 = vst [vmem:[%s2915_s12 + $0xf0] sm:$0xff] %v1590_v62 }
 0x376   : > { %1752 = vst [vmem:[%s2915_s12 + $0xf8] sm:$0xff] %v1591_v27 }
 0x377   : > { %2016 = shalt.err (!%p2013_p7)
}
 0x378   : > { %s2017_s17 = scalar_lea.hbm %s2958_s29, 4096  ;;  %s2021_s15 = scalar_lea.hbm %s3026_s5, 8192 }
 0x379   : > { %p2018_p9 = scmp.ne.s32.totalorder %s2958_s29, %s2017_s17  ;;  %p2022_p5 = scmp.lt.u32.totalorder %s2958_s29, %s3026_s5 }
 0x37a   : > { %p2023_p11 = scmp.lt.u32.totalorder %s2021_s15, %s2017_s17  ;;  %p2025_p4 = scmp.lt.u32.totalorder %s2017_s17, %s2958_s29 }
 0x37b   : > { %p2019_p1 = pnand %p2018_p9, %p2258_p12 }
 0x37c   : > { %p2024_p2 = por %p2023_p11, %p2022_p5 }
 0x37d   : > { %p2020_p0 = pneg %p2019_p1 }
 0x37e   : > { %p2026_p6 = por %p2025_p4, %p2024_p2 }
 0x380   : > { %p2027_p8 = pnand %p2026_p6, %p2020_p0 }
 0x382   : > { %2030 = shalt.err (!%p2027_p8)
}
 0x383   : > { %s2130_s24 = smov 256  }
 0x384   : > { %1769 = dma.vmem_to_hbm [thread:$0]  (%p2258_p12), %s2968_s30, 4096, %s2958_s29, %s1610_s19, %s2130_s24, %s2130_s24, %s2098_s14  }
 0x385 PF: > { %s1639_s4 = sand.u32 1, %s2061_s20   ;;  %p3056_p10 = scmp.ne.s32.totalorder %s3037_s26, 0 }
 0x386   : > { %p3057_p13 = scmp.ge.s32.totalorder %s2073_s23, 2  ;;  %s1640_s13 = scalar_lea.sflag [#allocation6], %s1639_s4 }
 0x388   : > { %p1780_p3 = pnand %p3057_p13, %p3056_p10 }
 0x38a   : > { %2056 = dma.done.wait (!%p1780_p3), %s1640_s13, 4096  }
 0x38b   : > { %2058 = vsyncadd (!%p1780_p3), %s1640_s13, 4294963200  ;;  %p20_p7 = scmp.ge.s32.totalorder %s2220_s6, 4   ;;  %s3058_s20 = smov %s2065_s21 }
 0x38c   : > { %s3059_s21 = smov %s2069_s22  ;;  %s3060_s22 = smov %s2254_s28 }
 0x38d   : > { %s3061_s23 = smov %s2220_s6  ;;  %22 = sbr.rel (!%p20_p7) target bundleno = 8 (0x8), region = 141 }
 0x394   :  { %1645 = vsyncpa [#allocation5], 1 }
 0x395   :  { %1647 = vsyncpa [#allocation5 + $0x1], 1 }
 0x396   :  { %1648 = vsyncpa [#allocation8], 1 }
 0x397   :  { %1649 = vsyncpa [#allocation6], 1 }
 0x398   :  { %1651 = vsyncpa [#allocation6 + $0x1], 1 }

</bundles_post_ra>
